<compile_context>
chip_gen: v7x
topology: tpu7x:2x2x1
jax: 0.10.0
libtpu: 0.0.40
codegen_flags: <defaults>
</compile_context>

<pallas_src>
import functools

import jax
import jax.numpy as jnp
from jax.experimental import pallas as pl
from jax.experimental.pallas import tpu as pltpu

_VMEM_LIMIT = 32 * 1024 * 1024   # explicit scoped-VMEM budget, safe on v5e/v6e/v7x


# ---------------------------------------------------------------------------
# tiling helpers
# ---------------------------------------------------------------------------
def _pick_nt(N, cap=2048):
    """Largest lane-aligned N tile (multiple of 128) dividing N; else the full N."""
    for t in (2048, 1024, 512, 256, 128):
        if t <= cap and N % t == 0:
            return t
    return N


def _pick_group_tile(G, K, max_rows=4096):
    """Group tile tg with tg | G, tg % 8 == 0 and tg*K matmul rows moderate.
    Prefer >= 2 grid steps so the 'parallel' axis can shard across v7x's 2 TensorCores."""
    cap = max(1, max_rows // K)
    divs = [t for t in range(8, min(G, cap) + 1) if G % t == 0 and t % 8 == 0]
    if not divs:
        return G
    divs2 = [t for t in divs if G // t >= 2]
    return max(divs2) if divs2 else max(divs)


# ---------------------------------------------------------------------------
# Pallas kernel 1: pairwise squared euclidean distance (shared across all radii)
#   src [S, d], dst [Nt, d], s2 [S, 1], d2 [1, Nt]  ->  s2 + d2 - 2 * src @ dst^T
# ---------------------------------------------------------------------------
def _pairwise_dist_kernel(src_ref, dst_ref, s2_ref, d2_ref, out_ref):
    src = src_ref[...]                                       # (S, d)
    dst = dst_ref[...]                                       # (Nt, d)
    dots = jax.lax.dot_general(
        src, dst, (((1,), (1,)), ((), ())),
        preferred_element_type=jnp.float32)                  # (S, Nt) MXU, f32 acc
    out_ref[...] = (s2_ref[...] + d2_ref[...]) - 2.0 * dots  # VPU broadcast adds


def pairwise_sqrdist(src, dst):
    """src [B,S,d], dst [B,N,d] -> [B,S,N]"""
    B, S, d = src.shape
    N = dst.shape[1]
    nt = _pick_nt(N)
    s2 = jnp.sum(src * src, axis=-1, keepdims=True)          # [B,S,1]  (tiny, plain JAX)
    d2 = jnp.sum(dst * dst, axis=-1)[:, None, :]             # [B,1,N]  reused for all tiles

    flops = int(2 * B * S * N * d + 3 * B * S * N)
    bytes_accessed = int(4 * (B * S * d + B * N * d + B * S + B * N + B * S * N))

    return pl.pallas_call(
        _pairwise_dist_kernel,
        out_shape=jax.ShapeDtypeStruct((B, S, N), jnp.float32),
        grid=(B, N // nt),
        in_specs=[
            pl.BlockSpec((None, S, d), lambda b, n: (b, 0, 0)),
            pl.BlockSpec((None, nt, d), lambda b, n: (b, n, 0)),
            pl.BlockSpec((None, S, 1), lambda b, n: (b, 0, 0)),
            pl.BlockSpec((None, 1, nt), lambda b, n: (b, 0, n)),
        ],
        out_specs=pl.BlockSpec((None, S, nt), lambda b, n: (b, 0, n)),
        compiler_params=pltpu.CompilerParams(
            dimension_semantics=("parallel", "parallel"),
            vmem_limit_bytes=_VMEM_LIMIT),
        cost_estimate=pl.CostEstimate(flops=flops, transcendentals=0,
                                      bytes_accessed=bytes_accessed),
    )(src, dst, s2, d2)


# ---------------------------------------------------------------------------
# Pallas kernel 2: per-point MLP (1x1 conv w/ folded BN + ReLU stack) + max over K.
# Input block is (tg*K, Cin): the K neighbours are folded into the matmul M dim.
# Output block is (tg, Cout_pad) with Cout_pad a multiple of 128 (lane-dense stores).
# ---------------------------------------------------------------------------
def _make_mlp_max_kernel(num_layers, kc):
    def kernel(x_ref, *rest):
        out_ref = rest[-1]
        params = rest[:-1]
        h = x_ref[...]                                       # (tg*K, Cin) bf16
        for j in range(num_layers):
            w = params[2 * j][...]                           # (cin_j, cout_j) bf16
            b = params[2 * j + 1][...]                       # (1, cout_j)     f32
            h = jnp.dot(h, w, preferred_element_type=jnp.float32)   # MXU, f32 acc
            h = jnp.maximum(h + b, 0.0)                      # folded BN bias + ReLU (f32)
            if j + 1 < num_layers:
                h = h.astype(jnp.bfloat16)                   # bf16 feed for next matmul
        rows, cout = h.shape
        h = h.reshape(rows // kc, kc, cout)                  # (tg, K, Cout_pad) — free split
        out_ref[...] = jnp.max(h, axis=1)                    # max-pool over K neighbours
    return kernel


def mlp_max_pallas(grouped, layer_params):
    """grouped: [G, K, Cin] grouped features; layer_params: [(W [cin,cout], b [1,cout]), ...].
    Returns [G, Cout_last] (max over the K neighbours of each group)."""
    G, K, Cin = grouped.shape
    tg = _pick_group_tile(G, K)
    num_layers = len(layer_params)
    cout_true = layer_params[-1][0].shape[1]
    cout_pad = ((cout_true + 127) // 128) * 128              # lane-dense output width

    # flatten so one block = tg consecutive groups x all K neighbours (contiguous in HBM)
    x_flat = grouped.reshape(G * K, Cin).astype(jnp.bfloat16)

    args = [x_flat]
    in_specs = [pl.BlockSpec((tg * K, Cin), lambda g: (g, 0))]
    for j, (w, b) in enumerate(layer_params):
        if j == num_layers - 1 and cout_pad != cout_true:
            w = jnp.pad(w, ((0, 0), (0, cout_pad - cout_true)))
            b = jnp.pad(b, ((0, 0), (0, cout_pad - cout_true)))
        args += [w.astype(jnp.bfloat16), b.astype(jnp.float32)]
        # constant index_map -> weight/bias tiles stay resident across grid steps
        in_specs += [pl.BlockSpec(w.shape, lambda g: (0, 0)),
                     pl.BlockSpec(b.shape, lambda g: (0, 0))]

    flops = 0
    cin_j = Cin
    for (w, _) in layer_params:
        flops += 2 * G * K * cin_j * w.shape[1]
        cin_j = w.shape[1]
    bytes_accessed = int(G * K * Cin * 2 + G * cout_pad * 4)

    out = pl.pallas_call(
        _make_mlp_max_kernel(num_layers, K),
        out_shape=jax.ShapeDtypeStruct((G, cout_pad), jnp.float32),
        grid=(G // tg,),
        in_specs=in_specs,
        out_specs=pl.BlockSpec((tg, cout_pad), lambda g: (g, 0)),
        compiler_params=pltpu.CompilerParams(
            dimension_semantics=("parallel",),
            vmem_limit_bytes=_VMEM_LIMIT),
        cost_estimate=pl.CostEstimate(flops=int(flops), transcendentals=0,
                                      bytes_accessed=bytes_accessed),
    )(*args)
    return out[:, :cout_true]


# ---------------------------------------------------------------------------
# Plain-JAX glue (data-dependent sampling / gathering).
# ---------------------------------------------------------------------------
def point_from_index(points, idx):
    """points [B, N, D], idx [B, ...] int -> [B, ..., D]"""
    B, N, D = points.shape
    flat_idx = idx.reshape(B, -1)
    gathered = jnp.take_along_axis(points, flat_idx[:, :, None], axis=1)
    return gathered.reshape(idx.shape + (D,))


def farthest_point_sampling(xyz, num_centroids):
    """xyz [B, N, d] -> centroid indices [B, num_centroids]"""
    # TODO(synk): sequential data-dependent FPS loop kept in plain JAX (lax.fori_loop).
    B, N, _ = xyz.shape
    batch_idx = jnp.arange(B)

    def body(i, state):
        distance, farthest, centroids = state
        centroids = centroids.at[:, i].set(farthest)
        centroid = xyz[batch_idx, farthest][:, None, :]            # [B,1,d]
        dist = jnp.sum((xyz - centroid) ** 2, axis=-1)
        distance = jnp.where(dist < distance, dist, distance)
        farthest = jnp.argmax(distance, axis=-1).astype(jnp.int32)
        return distance, farthest, centroids

    distance = jnp.full((B, N), 1e10, jnp.float32)
    farthest = jnp.zeros((B,), jnp.int32)   # torch.randint replaced by fixed start (determinism)
    centroids = jnp.zeros((B, num_centroids), jnp.int32)
    _, _, centroids = jax.lax.fori_loop(0, num_centroids, body,
                                        (distance, farthest, centroids))
    return centroids


def ball_query(radius, K, sqrdists, N):
    """sqrdists [B,S,N] (shared across radii) -> group indices [B,S,K]"""
    B, S, _ = sqrdists.shape
    idx = jnp.broadcast_to(jnp.arange(N, dtype=jnp.int32), (B, S, N))
    idx = jnp.where(sqrdists > radius ** 2, jnp.int32(N), idx)
    # first K in-radius indices in ascending order == K largest of (-idx); avoids full sort
    neg_topk, _ = jax.lax.top_k(-idx, K)
    idx = -neg_topk                                                # [B,S,K], ascending
    first = jnp.broadcast_to(idx[:, :, :1], (B, S, K))
    idx = jnp.where(idx == N, first, idx)
    idx = jnp.clip(idx, 0, N - 1)
    return idx


# ---------------------------------------------------------------------------
# SetAbstractionMSG forward
# ---------------------------------------------------------------------------
def set_abstraction_msg(xyz, feats, params, desired_num_of_centroids,
                        radius_list, nsample_list):
    B, N, d = xyz.shape
    S = desired_num_of_centroids

    centroid_idx = farthest_point_sampling(xyz, S)
    new_xyz = point_from_index(xyz, centroid_idx)                  # [B, S, d]

    # distance matrix is identical for every radius -> compute once (Pallas) and reuse
    sqrdists = pairwise_sqrdist(new_xyz, xyz)                      # [B, S, N]

    outs = []
    for i, radius in enumerate(radius_list):
        K = nsample_list[i]
        group_idx = ball_query(radius, K, sqrdists, N)             # [B,S,K]
        # TODO(synk): at large N/K the gather could be fused into the MLP kernel via
        # scalar-prefetched group_idx + manual DMA row gathers; kept in XLA here.
        grouped_xyz = point_from_index(xyz, group_idx) - new_xyz[:, :, None, :]
        grouped_feats = point_from_index(feats, group_idx)         # [B,S,K,C]
        grouped = jnp.concatenate([grouped_feats, grouped_xyz], axis=-1)  # [B,S,K,C+d]
        grouped = grouped.reshape(B * S, K, -1)                    # [G,K,Cin] (no transpose)

        new_points = mlp_max_pallas(grouped, params[i])            # [G, Cout_i]
        outs.append(new_points.reshape(B, S, -1))

    # torch: cat over channel dim then permute(0,2,1)  ==  channel-last concat here
    new_points_concat = jnp.concatenate(outs, axis=-1)             # [B, S, sum(Cout)]
    return new_xyz, new_points_concat


# ---------------------------------------------------------------------------
# Deterministic parameter init (Conv2d 1x1 weight/bias + BatchNorm folded into W and bias).
# ---------------------------------------------------------------------------
def init_params(key, in_channel, d, mlp_list, eps=1e-5):
    params = []
    for mlp in mlp_list:
        layers = []
        cin = in_channel + d
        for cout in mlp:
            key, kw, kb, kg, kbe = jax.random.split(key, 5)
            W = 0.1 * jax.random.normal(kw, (cout, cin), jnp.float32)   # Conv2d 1x1 weight
            b = 0.05 * jax.random.normal(kb, (cout,), jnp.float32)      # Conv2d bias
            gamma = 1.0 + 0.1 * jax.random.normal(kg, (cout,), jnp.float32)
            beta = 0.05 * jax.random.normal(kbe, (cout,), jnp.float32)
            run_mean = jnp.zeros((cout,), jnp.float32)
            run_var = jnp.ones((cout,), jnp.float32)
            s = gamma / jnp.sqrt(run_var + eps)                     # BN (inference) scale
            W_eff = (W * s[:, None]).T                              # fold scale into weight
            b_eff = ((b - run_mean) * s + beta).reshape(1, cout)    # folded bias
            layers.append((W_eff, b_eff))
            cin = cout
        params.append(layers)
    return params


if __name__ == "__main__":
    key = jax.random.PRNGKey(0)
    B, N, d, C = 2, 64, 3, 4
    desired_num_of_centroids = 16
    radius_list = [0.2, 0.4]
    nsample_list = [8, 16]
    mlp_list = [[16, 32], [16, 32]]
    in_channel = C

    k1, k2, kp = jax.random.split(key, 3)
    xyz = jax.random.uniform(k1, (B, N, d), dtype=jnp.float32)          # [B, N, d]
    feats = jax.random.normal(k2, (B, N, C), dtype=jnp.float32)         # [B, N, C]
    params = init_params(kp, in_channel, d, mlp_list)

    fwd = jax.jit(functools.partial(
        set_abstraction_msg,
        params=params,
        desired_num_of_centroids=desired_num_of_centroids,
        radius_list=radius_list,
        nsample_list=nsample_list))

    new_xyz, new_points = fwd(xyz, feats)
    jax.block_until_ready((new_xyz, new_points))
    assert new_xyz.shape == (B, desired_num_of_centroids, d)
    assert new_points.shape == (B, desired_num_of_centroids, sum(m[-1] for m in mlp_list))
    assert bool(jnp.all(jnp.isfinite(new_points)))
    print("KERNEL_OK")
</pallas_src>

<mosaic_0001>
module attributes {stable_mosaic.version = 11 : i64} {
  func.func @_pairwise_dist_kernel(%arg0: i32, %arg1: i32, %arg2: memref<1x16x3xf32, #tpu.memory_space<vmem>>, %arg3: memref<1x64x3xf32, #tpu.memory_space<vmem>>, %arg4: memref<1x16x1xf32, #tpu.memory_space<vmem>>, %arg5: memref<1x1x64xf32, #tpu.memory_space<vmem>>, %arg6: memref<1x16x64xf32, #tpu.memory_space<vmem>>) attributes {dimension_semantics = [#tpu.dimension_semantics<parallel>, #tpu.dimension_semantics<parallel>], iteration_bounds = array<i64: 2, 1>, scalar_prefetch = 0 : i64, scratch_operands = 0 : i64, tpu.core_type = #tpu.core_type<tc>, window_params = [{transform_indices = @transform_0, window_bounds = array<i64: 1, 16, 3>}, {transform_indices = @transform_1, window_bounds = array<i64: 1, 64, 3>}, {transform_indices = @transform_2, window_bounds = array<i64: 1, 16, 1>}, {transform_indices = @transform_3, window_bounds = array<i64: 1, 1, 64>}, {transform_indices = @transform_4, window_bounds = array<i64: 1, 16, 64>}]} {
    %c0 = arith.constant 0 : index
    %c0_0 = arith.constant 0 : index
    %c0_1 = arith.constant 0 : index
    %0 = vector.load %arg2[%c0, %c0_0, %c0_1] : memref<1x16x3xf32, #tpu.memory_space<vmem>>, vector<1x16x3xf32>
    %1 = vector.shape_cast %0 : vector<1x16x3xf32> to vector<16x3xf32>
    %c0_2 = arith.constant 0 : index
    %c0_3 = arith.constant 0 : index
    %c0_4 = arith.constant 0 : index
    %2 = vector.load %arg3[%c0_2, %c0_3, %c0_4] : memref<1x64x3xf32, #tpu.memory_space<vmem>>, vector<1x64x3xf32>
    %3 = vector.shape_cast %2 : vector<1x64x3xf32> to vector<64x3xf32>
    %cst = arith.constant dense<0.000000e+00> : vector<16x64xf32>
    %4 = tpu.matmul %1, %3, %cst {dimension_numbers = #tpu.dot_dimension_numbers<[1], [1], [0], [0], [0, 0, 1, 0], [], []>} : vector<16x3xf32>, vector<64x3xf32>, vector<16x64xf32> -> vector<16x64xf32>
    %c0_5 = arith.constant 0 : index
    %c0_6 = arith.constant 0 : index
    %c0_7 = arith.constant 0 : index
    %5 = vector.load %arg4[%c0_5, %c0_6, %c0_7] : memref<1x16x1xf32, #tpu.memory_space<vmem>>, vector<1x16x1xf32>
    %6 = vector.shape_cast %5 : vector<1x16x1xf32> to vector<16x1xf32>
    %c0_8 = arith.constant 0 : index
    %c0_9 = arith.constant 0 : index
    %c0_10 = arith.constant 0 : index
    %7 = vector.load %arg5[%c0_8, %c0_9, %c0_10] : memref<1x1x64xf32, #tpu.memory_space<vmem>>, vector<1x1x64xf32>
    %8 = vector.shape_cast %7 : vector<1x1x64xf32> to vector<1x64xf32>
    %9 = vector.broadcast %6 : vector<16x1xf32> to vector<16x64xf32>
    %10 = vector.broadcast %8 : vector<1x64xf32> to vector<16x64xf32>
    %11 = arith.addf %9, %10 : vector<16x64xf32>
    %cst_11 = arith.constant 2.000000e+00 : f32
    %12 = vector.broadcast %cst_11 : f32 to vector<16x64xf32>
    %13 = arith.mulf %12, %4 : vector<16x64xf32>
    %14 = arith.subf %11, %13 : vector<16x64xf32>
    %c0_12 = arith.constant 0 : index
    %c0_13 = arith.constant 0 : index
    %c0_14 = arith.constant 0 : index
    %15 = vector.load %arg6[%c0_12, %c0_13, %c0_14] : memref<1x16x64xf32, #tpu.memory_space<vmem>>, vector<1x16x64xf32>
    %16 = vector.shape_cast %15 : vector<1x16x64xf32> to vector<16x64xf32>
    %17 = vector.shape_cast %14 : vector<16x64xf32> to vector<1x16x64xf32>
    tpu.vector_store %arg6[%c0_12, %c0_13, %c0_14], %17 {strides = array<i32>} : memref<1x16x64xf32, #tpu.memory_space<vmem>>, vector<1x16x64xf32>,
    return
  }
  func.func @transform_0(%arg0: i32, %arg1: i32) -> (i32, i32, i32) {
    %c0_i32 = arith.constant 0 : i32
    %c0_i32_0 = arith.constant 0 : i32
    %c0_i32_1 = arith.constant 0 : i32
    return %arg0, %c0_i32, %c0_i32_0 : i32, i32, i32
  }
  func.func @transform_1(%arg0: i32, %arg1: i32) -> (i32, i32, i32) {
    %c0_i32 = arith.constant 0 : i32
    %c0_i32_0 = arith.constant 0 : i32
    return %arg0, %arg1, %c0_i32 : i32, i32, i32
  }
  func.func @transform_2(%arg0: i32, %arg1: i32) -> (i32, i32, i32) {
    %c0_i32 = arith.constant 0 : i32
    %c0_i32_0 = arith.constant 0 : i32
    %c0_i32_1 = arith.constant 0 : i32
    return %arg0, %c0_i32, %c0_i32_0 : i32, i32, i32
  }
  func.func @transform_3(%arg0: i32, %arg1: i32) -> (i32, i32, i32) {
    %c0_i32 = arith.constant 0 : i32
    %c0_i32_0 = arith.constant 0 : i32
    return %arg0, %c0_i32, %arg1 : i32, i32, i32
  }
  func.func @transform_4(%arg0: i32, %arg1: i32) -> (i32, i32, i32) {
    %c0_i32 = arith.constant 0 : i32
    %c0_i32_0 = arith.constant 0 : i32
    return %arg0, %c0_i32, %arg1 : i32, i32, i32
  }
}

module attributes {stable_mosaic.version = 11 : i64} {
  func.func @kernel(%arg0: i32, %arg1: memref<128x7xbf16, #tpu.memory_space<vmem>>, %arg2: memref<7x16xbf16, #tpu.memory_space<vmem>>, %arg3: memref<1x16xf32, #tpu.memory_space<vmem>>, %arg4: memref<16x128xbf16, #tpu.memory_space<vmem>>, %arg5: memref<1x128xf32, #tpu.memory_space<vmem>>, %arg6: memref<16x128xf32, #tpu.memory_space<vmem>>) attributes {dimension_semantics = [#tpu.dimension_semantics<parallel>], iteration_bounds = array<i64: 2>, scalar_prefetch = 0 : i64, scratch_operands = 0 : i64, tpu.core_type = #tpu.core_type<tc>, window_params = [{transform_indices = @transform_0, window_bounds = array<i64: 128, 7>}, {pipeline_mode = #tpu.pipeline_mode<synchronous>, transform_indices = @transform_1, window_bounds = array<i64: 7, 16>}, {pipeline_mode = #tpu.pipeline_mode<synchronous>, transform_indices = @transform_2, window_bounds = array<i64: 1, 16>}, {pipeline_mode = #tpu.pipeline_mode<synchronous>, transform_indices = @transform_3, window_bounds = array<i64: 16, 128>}, {pipeline_mode = #tpu.pipeline_mode<synchronous>, transform_indices = @transform_4, window_bounds = array<i64: 1, 128>}, {transform_indices = @transform_5, window_bounds = array<i64: 16, 128>}]} {
    %c0 = arith.constant 0 : index
    %c0_0 = arith.constant 0 : index
    %0 = vector.load %arg1[%c0, %c0_0] : memref<128x7xbf16, #tpu.memory_space<vmem>>, vector<128x7xbf16>
    %c0_1 = arith.constant 0 : index
    %c0_2 = arith.constant 0 : index
    %1 = vector.load %arg2[%c0_1, %c0_2] : memref<7x16xbf16, #tpu.memory_space<vmem>>, vector<7x16xbf16>
    %c0_3 = arith.constant 0 : index
    %c0_4 = arith.constant 0 : index
    %2 = vector.load %arg3[%c0_3, %c0_4] : memref<1x16xf32, #tpu.memory_space<vmem>>, vector<1x16xf32>
    %cst = arith.constant dense<0.000000e+00> : vector<128x16xf32>
    %3 = tpu.matmul %0, %1, %cst {dimension_numbers = #tpu.dot_dimension_numbers<[1], [0], [0], [1], [0, 0, 1, 1], [], []>} : vector<128x7xbf16>, vector<7x16xbf16>, vector<128x16xf32> -> vector<128x16xf32>
    %4 = vector.broadcast %2 : vector<1x16xf32> to vector<128x16xf32>
    %5 = arith.addf %3, %4 : vector<128x16xf32>
    %cst_5 = arith.constant 0.000000e+00 : f32
    %6 = vector.broadcast %cst_5 : f32 to vector<128x16xf32>
    %7 = arith.maximumf %5, %6 : vector<128x16xf32>
    %8 = arith.truncf %7 : vector<128x16xf32> to vector<128x16xbf16>
    %c0_6 = arith.constant 0 : index
    %c0_7 = arith.constant 0 : index
    %9 = vector.load %arg4[%c0_6, %c0_7] : memref<16x128xbf16, #tpu.memory_space<vmem>>, vector<16x128xbf16>
    %c0_8 = arith.constant 0 : index
    %c0_9 = arith.constant 0 : index
    %10 = vector.load %arg5[%c0_8, %c0_9] : memref<1x128xf32, #tpu.memory_space<vmem>>, vector<1x128xf32>
    %cst_10 = arith.constant dense<0.000000e+00> : vector<128x128xf32>
    %11 = tpu.matmul %8, %9, %cst_10 {dimension_numbers = #tpu.dot_dimension_numbers<[1], [0], [0], [1], [0, 0, 1, 1], [], []>} : vector<128x16xbf16>, vector<16x128xbf16>, vector<128x128xf32> -> vector<128x128xf32>
    %12 = vector.broadcast %10 : vector<1x128xf32> to vector<128x128xf32>
    %13 = arith.addf %11, %12 : vector<128x128xf32>
    %cst_11 = arith.constant 0.000000e+00 : f32
    %14 = vector.broadcast %cst_11 : f32 to vector<128x128xf32>
    %15 = arith.maximumf %13, %14 : vector<128x128xf32>
    %16 = vector.shape_cast %15 : vector<128x128xf32> to vector<16x8x128xf32>
    %cst_12 = arith.constant dense<0xFF800000> : vector<16x128xf32>
    %17 = vector.multi_reduction <maximumf>, %16, %cst_12 [1] : vector<16x8x128xf32> to vector<16x128xf32>
    %c0_13 = arith.constant 0 : index
    %c0_14 = arith.constant 0 : index
    %18 = vector.load %arg6[%c0_13, %c0_14] : memref<16x128xf32, #tpu.memory_space<vmem>>, vector<16x128xf32>
    tpu.vector_store %arg6[%c0_13, %c0_14], %17 {strides = array<i32>} : memref<16x128xf32, #tpu.memory_space<vmem>>, vector<16x128xf32>,
    return
  }
  func.func @transform_0(%arg0: i32) -> (i32, i32) {
    %c0_i32 = arith.constant 0 : i32
    %c0_i32_0 = arith.constant 0 : i32
    return %arg0, %c0_i32 : i32, i32
  }
  func.func @transform_1(%arg0: i32) -> (i32, i32) {
    %c0_i32 = arith.constant 0 : i32
    %c0_i32_0 = arith.constant 0 : i32
    %c0_i32_1 = arith.constant 0 : i32
    return %c0_i32, %c0_i32_0 : i32, i32
  }
  func.func @transform_2(%arg0: i32) -> (i32, i32) {
    %c0_i32 = arith.constant 0 : i32
    %c0_i32_0 = arith.constant 0 : i32
    %c0_i32_1 = arith.constant 0 : i32
    return %c0_i32, %c0_i32_0 : i32, i32
  }
  func.func @transform_3(%arg0: i32) -> (i32, i32) {
    %c0_i32 = arith.constant 0 : i32
    %c0_i32_0 = arith.constant 0 : i32
    %c0_i32_1 = arith.constant 0 : i32
    return %c0_i32, %c0_i32_0 : i32, i32
  }
  func.func @transform_4(%arg0: i32) -> (i32, i32) {
    %c0_i32 = arith.constant 0 : i32
    %c0_i32_0 = arith.constant 0 : i32
    %c0_i32_1 = arith.constant 0 : i32
    return %c0_i32, %c0_i32_0 : i32, i32
  }
  func.func @transform_5(%arg0: i32) -> (i32, i32) {
    %c0_i32 = arith.constant 0 : i32
    %c0_i32_0 = arith.constant 0 : i32
    return %arg0, %c0_i32 : i32, i32
  }
}

module attributes {stable_mosaic.version = 11 : i64} {
  func.func @kernel(%arg0: i32, %arg1: memref<256x7xbf16, #tpu.memory_space<vmem>>, %arg2: memref<7x16xbf16, #tpu.memory_space<vmem>>, %arg3: memref<1x16xf32, #tpu.memory_space<vmem>>, %arg4: memref<16x128xbf16, #tpu.memory_space<vmem>>, %arg5: memref<1x128xf32, #tpu.memory_space<vmem>>, %arg6: memref<16x128xf32, #tpu.memory_space<vmem>>) attributes {dimension_semantics = [#tpu.dimension_semantics<parallel>], iteration_bounds = array<i64: 2>, scalar_prefetch = 0 : i64, scratch_operands = 0 : i64, tpu.core_type = #tpu.core_type<tc>, window_params = [{transform_indices = @transform_0, window_bounds = array<i64: 256, 7>}, {pipeline_mode = #tpu.pipeline_mode<synchronous>, transform_indices = @transform_1, window_bounds = array<i64: 7, 16>}, {pipeline_mode = #tpu.pipeline_mode<synchronous>, transform_indices = @transform_2, window_bounds = array<i64: 1, 16>}, {pipeline_mode = #tpu.pipeline_mode<synchronous>, transform_indices = @transform_3, window_bounds = array<i64: 16, 128>}, {pipeline_mode = #tpu.pipeline_mode<synchronous>, transform_indices = @transform_4, window_bounds = array<i64: 1, 128>}, {transform_indices = @transform_5, window_bounds = array<i64: 16, 128>}]} {
    %c0 = arith.constant 0 : index
    %c0_0 = arith.constant 0 : index
    %0 = vector.load %arg1[%c0, %c0_0] : memref<256x7xbf16, #tpu.memory_space<vmem>>, vector<256x7xbf16>
    %c0_1 = arith.constant 0 : index
    %c0_2 = arith.constant 0 : index
    %1 = vector.load %arg2[%c0_1, %c0_2] : memref<7x16xbf16, #tpu.memory_space<vmem>>, vector<7x16xbf16>
    %c0_3 = arith.constant 0 : index
    %c0_4 = arith.constant 0 : index
    %2 = vector.load %arg3[%c0_3, %c0_4] : memref<1x16xf32, #tpu.memory_space<vmem>>, vector<1x16xf32>
    %cst = arith.constant dense<0.000000e+00> : vector<256x16xf32>
    %3 = tpu.matmul %0, %1, %cst {dimension_numbers = #tpu.dot_dimension_numbers<[1], [0], [0], [1], [0, 0, 1, 1], [], []>} : vector<256x7xbf16>, vector<7x16xbf16>, vector<256x16xf32> -> vector<256x16xf32>
    %4 = vector.broadcast %2 : vector<1x16xf32> to vector<256x16xf32>
    %5 = arith.addf %3, %4 : vector<256x16xf32>
    %cst_5 = arith.constant 0.000000e+00 : f32
    %6 = vector.broadcast %cst_5 : f32 to vector<256x16xf32>
    %7 = arith.maximumf %5, %6 : vector<256x16xf32>
    %8 = arith.truncf %7 : vector<256x16xf32> to vector<256x16xbf16>
    %c0_6 = arith.constant 0 : index
    %c0_7 = arith.constant 0 : index
    %9 = vector.load %arg4[%c0_6, %c0_7] : memref<16x128xbf16, #tpu.memory_space<vmem>>, vector<16x128xbf16>
    %c0_8 = arith.constant 0 : index
    %c0_9 = arith.constant 0 : index
    %10 = vector.load %arg5[%c0_8, %c0_9] : memref<1x128xf32, #tpu.memory_space<vmem>>, vector<1x128xf32>
    %cst_10 = arith.constant dense<0.000000e+00> : vector<256x128xf32>
    %11 = tpu.matmul %8, %9, %cst_10 {dimension_numbers = #tpu.dot_dimension_numbers<[1], [0], [0], [1], [0, 0, 1, 1], [], []>} : vector<256x16xbf16>, vector<16x128xbf16>, vector<256x128xf32> -> vector<256x128xf32>
    %12 = vector.broadcast %10 : vector<1x128xf32> to vector<256x128xf32>
    %13 = arith.addf %11, %12 : vector<256x128xf32>
    %cst_11 = arith.constant 0.000000e+00 : f32
    %14 = vector.broadcast %cst_11 : f32 to vector<256x128xf32>
    %15 = arith.maximumf %13, %14 : vector<256x128xf32>
    %16 = vector.shape_cast %15 : vector<256x128xf32> to vector<16x16x128xf32>
    %cst_12 = arith.constant dense<0xFF800000> : vector<16x128xf32>
    %17 = vector.multi_reduction <maximumf>, %16, %cst_12 [1] : vector<16x16x128xf32> to vector<16x128xf32>
    %c0_13 = arith.constant 0 : index
    %c0_14 = arith.constant 0 : index
    %18 = vector.load %arg6[%c0_13, %c0_14] : memref<16x128xf32, #tpu.memory_space<vmem>>, vector<16x128xf32>
    tpu.vector_store %arg6[%c0_13, %c0_14], %17 {strides = array<i32>} : memref<16x128xf32, #tpu.memory_space<vmem>>, vector<16x128xf32>,
    return
  }
  func.func @transform_0(%arg0: i32) -> (i32, i32) {
    %c0_i32 = arith.constant 0 : i32
    %c0_i32_0 = arith.constant 0 : i32
    return %arg0, %c0_i32 : i32, i32
  }
  func.func @transform_1(%arg0: i32) -> (i32, i32) {
    %c0_i32 = arith.constant 0 : i32
    %c0_i32_0 = arith.constant 0 : i32
    %c0_i32_1 = arith.constant 0 : i32
    return %c0_i32, %c0_i32_0 : i32, i32
  }
  func.func @transform_2(%arg0: i32) -> (i32, i32) {
    %c0_i32 = arith.constant 0 : i32
    %c0_i32_0 = arith.constant 0 : i32
    %c0_i32_1 = arith.constant 0 : i32
    return %c0_i32, %c0_i32_0 : i32, i32
  }
  func.func @transform_3(%arg0: i32) -> (i32, i32) {
    %c0_i32 = arith.constant 0 : i32
    %c0_i32_0 = arith.constant 0 : i32
    %c0_i32_1 = arith.constant 0 : i32
    return %c0_i32, %c0_i32_0 : i32, i32
  }
  func.func @transform_4(%arg0: i32) -> (i32, i32) {
    %c0_i32 = arith.constant 0 : i32
    %c0_i32_0 = arith.constant 0 : i32
    %c0_i32_1 = arith.constant 0 : i32
    return %c0_i32, %c0_i32_0 : i32, i32
  }
  func.func @transform_5(%arg0: i32) -> (i32, i32) {
    %c0_i32 = arith.constant 0 : i32
    %c0_i32_0 = arith.constant 0 : i32
    return %arg0, %c0_i32 : i32, i32
  }
}

</mosaic_0001>

<bundles_post_ra>
// kernel: custom-call.12
= control target key start
LH: loop header
LB: loop body
LE: loop exit
PB: predicated region body
PF: predicated region fallthrough
CT: control target
= control target key end

     0   :  { %s6_s0 = inlined_call_operand.vmem [shape: f32[2,64], index: 0, kind: output, shape index: {}]  }

// kernel: set_abstraction_msg.3
= control target key start
LH: loop header
LB: loop body
LE: loop exit
PB: predicated region body
PF: predicated region fallthrough
CT: control target
= control target key end

     0   :  { %s721_s15 = smov 0   ;;  %s723_s16 = smov 0   ;;  %s797_s0 = inlined_call_operand.vmem [shape: f32[2,16,3], index: 0, kind: input, shape index: {}]   ;;  %s798_s1 = inlined_call_operand.vmem [shape: f32[2,64,3], index: 1, kind: input, shape index: {}]   ;;  %s799_s2 = inlined_call_operand.vmem [shape: f32[2,16,1], index: 2, kind: input, shape index: {}]   ;;  %s800_s3 = inlined_call_operand.vmem [shape: f32[2,1,64], index: 3, kind: input, shape index: {}]   ;;  %s801_s4 = inlined_call_operand.vmem [shape: f32[2,16,64], index: 4, kind: output, shape index: {}]  }
   0x1   :  { %s725_s17 = smov 0  }
   0x2 LB: > { %s26_s18 = sadd.s32 1, %s689_s16  ;;  %p566_p0 = scmp.ge.s32.totalorder %s693_s17, 1  ;;  %s693_s17 = sphi %s725_s17, %s14_s17   ;;  %s689_s16 = sphi %s723_s16, %s805_s16   ;;  %s685_s15 = sphi %s721_s15, %s804_s15  }
   0x3   : > { %p28_p1 = scmp.ge.s32.totalorder %s26_s18, 2  ;;  %p216_p2 = scmp.lt.s32.totalorder %s693_s17, 3 }
   0x5   : > { %s807_s18 = smov (%p28_p1, %s26_s18), 0  ;;  %p217_p3 = pnand %p566_p0, %p216_p2 }
   0x6   : > { %p265_p4 = scmp.lt.s32.totalorder (!%p217_p3), %s685_s15, 1  ;;  %v695_v0 = vmov (!%p217_p3), 0   ;;  %vm309_vm0 = vcmask (!%p217_p3), 23552   ;;  %vm440_vm2 = vcmask (!%p217_p3), 523264  }
   0x7   : > { %220 = sbr.rel (%p217_p3) target bundleno = 270 (0x10e), region = 36  ;;  %670 = vset.pattern.permute.xlu0 (!%p217_p3), %v695_v0  ;;  %vm750_vm1 = vmpackc.low (!%p217_p3), %vm309_vm0, %vm309_vm0 }
   0xe   : > { %s809_s15 = smov (!%p265_p4, %s685_s15), 1 }
   0xf   : > { %s589_s19 = sshll.u32 %s809_s15, 6  ;;  %s743_s20 = sshll.u32 %s809_s15, 4 }
  0x10   : > { %s278_s23 = scalar_lea.vmem %s798_s1, %s589_s19  ;;  %s269_s26 = scalar_lea.vmem %s797_s0, %s743_s20 }
  0x11   : > { %v301_v2 = vld [vmem:[%s278_s23] sm:$0xff]  ;;  %v302_v3 = vld [vmem:[%s278_s23 + $0x8] sm:$0xff]  ;;  %v303_v4 = vld [vmem:[%s278_s23 + $0x10] sm:$0xff]  ;;  %s284_s29 = scalar_lea.vmem %s799_s2, %s743_s20  ;;  %s290_s6 = scalar_lea.vmem %s800_s3, %s809_s15 }
  0x12   : > { %v621_v5 = vpack.c.bf16 %v302_v3, %v301_v2  ;;  %v304_v6 = vld [vmem:[%s278_s23 + $0x18] sm:$0xff]  ;;  %v299_v8 = vld [vmem:[%s269_s26] sm:$0xff]  ;;  %v416_v10 = vld [vmem:[%s284_s29 + $0x8] sm:$0xff]  ;;  %s298_s9 = scalar_lea.vmem %s801_s4, %s743_s20 }
  0x13   : > { %v627_v7 = vpack.c.bf16 %v304_v6, %v303_v4  ;;  %618 = vmatprep.mubr.msk.f32.mxu0 %vm309_vm0, %v299_v8  ;;  %v415_v9 = vld [vmem:[%s284_s29] sm:$0xff]  ;;  %v306_v12 = vld [vmem:[%s278_s23 + $0x28] sm:$0xff]  ;;  %v307_v14 = vld [vmem:[%s278_s23 + $0x30] sm:$0xff] }
  0x14   : > { %623 = vmatprep.subr.msk.bf16.mxu0 %vm750_vm1, %v621_v5  ;;  %420 = vperm.xlu0 %670, %v415_v9   ;;  %v305_v11 = vld [vmem:[%s278_s23 + $0x20] sm:$0xff]  ;;  %v308_v15 = vld [vmem:[%s278_s23 + $0x38] sm:$0xff]  ;;  %v300_v17 = vld [vmem:[%s269_s26 + $0x8] sm:$0xff] }
  0x15   : > { %626 = vmatpush3.bf16.xpose.msk.msra.mxu0 %vm750_vm1, %v621_v5  ;;  %v633_v13 = vpack.c.bf16 %v306_v12, %v305_v11  ;;  %v639_v16 = vpack.c.bf16 %v308_v15, %v307_v14  ;;  %v585_v19 = vld [vmem:[%s290_s6] ss:$0 sm:$0xff] }
  0x16   : > { %629 = vmatprep.subr.msk.bf16.mxu0 %vm750_vm1, %v627_v7 }
  0x18   : > { %425 = vperm.xlu0 %670, %v416_v10  }
  0x1d   : > { %632 = vmatpush3.bf16.xpose.msk.msra.mxu0 %vm750_vm1, %v627_v7 }
  0x1e   : > { %635 = vmatprep.subr.msk.bf16.mxu0 %vm750_vm1, %v633_v13 }
  0x25   : > { %638 = vmatpush3.bf16.xpose.msk.msra.mxu0 %vm750_vm1, %v633_v13 }
  0x26   : > { %641 = vmatprep.subr.msk.bf16.mxu0 %vm750_vm1, %v639_v16 }
  0x2d   : > { %644 = vmatpush3.bf16.xpose.msk.msra.mxu0 %vm750_vm1, %v639_v16 }
  0x34   : > { %619 = vmatmul.mubr.msk.f32.vlgmr.msra.gmra.mrb[0].mxu0 %vm309_vm0, %v300_v17 }
  0x93   : > { %v421_v18 = vpop.permute.xlu0 %420 }
  0x94   : > { %v434_v25 = vadd.f32 %v585_v19, %v421_v18 }
  0x97   : > { %v426_v20 = vpop.permute.xlu0 %425 }
  0x98   : > { %v435_v22 = vadd.f32 %v585_v19, %v426_v20 }
 0x107   : > { %v620_v21 = vpop.f32.mrb[0].mxu0 }
 0x108   : > { %v437_v23 = vmul.f32 2.0, %v620_v21  ;;  %v406_v24 = vpop.f32.mrb[1].mxu0 }
 0x109   : > { %v436_v26 = vmul.f32 2.0, %v406_v24 }
 0x10a   : > { %v439_v27 = vsub.f32 %v435_v22, %v437_v23 }
 0x10b   : > { %v438_v28 = vsub.f32 %v434_v25, %v436_v26 }
 0x10c   : > { %442 = vst.msk [vmem:[%s298_s9 + $0x8] sm:$0xff] %vm440_vm2, %v439_v27 }
 0x10d   : > { %441 = vst.msk [vmem:[%s298_s9] sm:$0xff] %vm440_vm2, %v438_v28 }
 0x10e PF: > { %s14_s17 = sadd.s32 1, %s693_s17   ;;  %s804_s15 = smov %s689_s16 }
 0x10f   : > { %p11_p5 = scmp.ge.s32.totalorder %s14_s17, 4   ;;  %s805_s16 = smov %s807_s18 }
 0x111   :  { %13 = sbr.rel (!%p11_p5) target bundleno = 2 (0x2), region = 75 }

// kernel: set_abstraction_msg.4
= control target key start
LH: loop header
LB: loop body
LE: loop exit
PB: predicated region body
PF: predicated region fallthrough
CT: control target
= control target key end

     0   :  { %s941_s18 = smov 0   ;;  %s1035_s0 = inlined_call_operand.vmem [shape: bf16[256,7], index: 0, kind: input, shape index: {}]   ;;  %s1036_s1 = inlined_call_operand.vmem [shape: bf16[7,16], index: 1, kind: input, shape index: {}]   ;;  %s1037_s2 = inlined_call_operand.vmem [shape: f32[1,16], index: 2, kind: input, shape index: {}]   ;;  %s1038_s3 = inlined_call_operand.vmem [shape: bf16[16,128], index: 3, kind: input, shape index: {}]   ;;  %s1039_s4 = inlined_call_operand.vmem [shape: f32[1,128], index: 4, kind: input, shape index: {}]   ;;  %s1040_s5 = inlined_call_operand.vmem [shape: f32[32,128], index: 5, kind: output, shape index: {}]  }
   0x1 LB: > { %s792_s19 = sadd.s32 4294967295, %s908_s18   ;;  %p796_p0 = scmp.ge.s32.totalorder %s908_s18, 1  ;;  %s908_s18 = sphi %s941_s18, %s15_s18  }
   0x2   : > { %p188_p1 = scmp.lt.s32.totalorder %s908_s18, 3 }
   0x4   : > { %p189_p2 = pnand %p796_p0, %p188_p1 }
   0x5   : > { %v245_v0 = vld [vmem:[%s1036_s1] sm:$0xf] (!%p189_p2)  ;;  %vm318_vm0 = vcmask (!%p189_p2), 1042432   ;;  %vm319_vm1 = vcmask (!%p189_p2), 1043456   ;;  %s797_s22 = sshll.u32 (!%p189_p2), %s792_s19, 4  ;;  %v910_v1 = vmov (!%p189_p2), 65535  }
   0x6   : > { %192 = sbr.rel (%p189_p2) target bundleno = 502 (0x1f6), region = 40  ;;  %v320_v2 = vsel (!%p189_p2), %vm318_vm0, 4294967295, %v910_v1  ;;  %p217_p3 = scmp.lt.s32.totalorder (!%p189_p2), %s797_s22, 31  ;;  %vm293_vm2 = vcmask (!%p189_p2), 56320   ;;  %v901_v13 = vld [vmem:[%s1038_s3] sm:$0xff] (!%p189_p2)   ;;  %vm461_vm3 = vcmask (!%p189_p2), 130048  }
   0x7   : > { %v321_v3 = vsel (!%p189_p2), %vm319_vm1, %v320_v2, 0  ;;  %866 = vmatprep.subr.bf16.mxu1 (!%p189_p2), %v901_v13  ;;  %v801_v14 = vld [vmem:[%s1037_s2] ss:$0 sm:$0xff] (!%p189_p2)  ;;  %vm711_vm4 = vcmask (!%p189_p2), 1041409   ;;  %vm713_vm5 = vcmask (!%p189_p2), 1042434   ;;  %vm715_vm6 = vcmask (!%p189_p2), 1043459  }
   0x8   : > { %v323_v4 = vand.u32 (!%p189_p2), %v321_v3, %v245_v0  ;;  %867 = vmatpush3.bf16.msra.mxu1 (!%p189_p2), %v901_v13  ;;  %s994_s8 = sshll.u32 (!%p189_p2), %s792_s19, 1  ;;  %vm717_vm7 = vcmask (!%p189_p2), 1044484   ;;  %vm719_vm8 = vcmask (!%p189_p2), 1045509   ;;  %vm721_vm9 = vcmask (!%p189_p2), 1046534  }
   0x9   : > { %p223_p4 = scmp.lt.s32.totalorder (!%p189_p2), %s994_s8, 3  ;;  %vm723_vm10 = vcmask (!%p189_p2), 1047559  }
   0xa   : > { %848 = vmatprep.subr.bf16.mxu0 (!%p189_p2), %v323_v4 }
   0xb   : > { %849 = vmatpush3.bf16.msra.mxu0 (!%p189_p2), %v323_v4 }
   0xd   : > { %s1042_s22 = smov (!%p217_p3, %s797_s22), 31  ;;  %s1044_s8 = smov (!%p223_p4, %s994_s8), 3 }
   0xe   : > { %s798_s23 = sshll.u32 %s1042_s22, 2  ;;  %s800_s9 = sshll.u32 %s1044_s8, 3 }
   0xf   : > { %s220_s26 = scalar_lea.vmem %s1035_s0, %s798_s23  ;;  %s1016_s12 = scalar_lea.vmem %s1040_s5, %s800_s9 }
  0x10   : > { %v893_v5 = vld [vmem:[%s220_s26] sm:$0xff]   ;;  %v894_v6 = vld [vmem:[%s220_s26 + $0x8] sm:$0xff]   ;;  %v895_v7 = vld [vmem:[%s220_s26 + $0x10] sm:$0xff]  }
  0x11   : > { %850 = vmatprep.mubr.msk.bf16.mxu0 %vm293_vm2, %v893_v5  ;;  %v896_v8 = vld [vmem:[%s220_s26 + $0x18] sm:$0xff]   ;;  %v897_v9 = vld [vmem:[%s220_s26 + $0x20] sm:$0xff]   ;;  %v898_v10 = vld [vmem:[%s220_s26 + $0x28] sm:$0xff]  }
  0x12   : > { %851 = vmatmul.mubr.msk.bf16.vlgmr.msra.gmra.mrb[0].mxu0 %vm293_vm2, %v894_v6  ;;  %v899_v11 = vld [vmem:[%s220_s26 + $0x30] sm:$0xff]   ;;  %v900_v12 = vld [vmem:[%s220_s26 + $0x38] sm:$0xff]  }
  0x13   : > { %854 = vmatprep.mubr.msk.bf16.mxu0 %vm293_vm2, %v895_v7  ;;  %v982_v7 = vld [vmem:[%s1039_s4] ss:$0 sm:$0xff] }
  0x1a   : > { %855 = vmatmul.mubr.msk.bf16.gmra.mrb[4].mxu0 %vm293_vm2, %v896_v8 }
  0x1b   : > { %858 = vmatprep.mubr.msk.bf16.mxu0 %vm293_vm2, %v897_v9 }
  0x22   : > { %859 = vmatmul.mubr.msk.bf16.gmra.mrb[8].mxu0 %vm293_vm2, %v898_v10 }
  0x23   : > { %862 = vmatprep.mubr.msk.bf16.mxu0 %vm293_vm2, %v899_v11 }
  0x2a   : > { %863 = vmatmul.mubr.msk.bf16.gmra.mrb[12].mxu0 %vm293_vm2, %v900_v12 }
  0xe5   : > { %v852_v15 = vpop.f32.mrb[0].mxu0 }
  0xe6   : > { %v368_v16 = vadd.f32 %v852_v15, %v801_v14  ;;  %v359_v17 = vpop.f32.mrb[1].mxu0 }
  0xe7   : > { %v360_v18 = vadd.f32 %v801_v14, %v359_v17  ;;  %v853_v19 = vpop.f32.mrb[2].mxu0 }
  0xe8   : > { %v371_v20 = vadd.f32 %v853_v19, %v801_v14  ;;  %v362_v21 = vpop.f32.mrb[3].mxu0  ;;  %v424_v23 = vmax.f32 %v368_v16, 0.0 }
  0xe9   : > { %v363_v22 = vadd.f32 %v801_v14, %v362_v21  ;;  %v422_v25 = vmax.f32 %v360_v18, 0.0 }
  0xea   : > { %v425_v24 = vmax.f32 %v371_v20, 0.0 }
  0xeb   : > { %v423_v26 = vmax.f32 %v363_v22, 0.0 }
  0xec   : > { %v439_v27 = vpack.c.bf16 %v425_v24, %v424_v23 }
  0xed   : > { %v856_v28 = vpop.f32.mrb[4].mxu0  ;;  %v438_v29 = vpack.c.bf16 %v423_v26, %v422_v25 }
  0xee   : > { %v384_v30 = vadd.f32 %v856_v28, %v801_v14  ;;  %v375_v31 = vpop.f32.mrb[5].mxu0 }
  0xef   : > { %v376_v32 = vadd.f32 %v801_v14, %v375_v31  ;;  %v857_v33 = vpop.f32.mrb[6].mxu0  ;;  %868 = vmatprep.mubr.msk.bf16.mxu1 %vm461_vm3, %v438_v29 }
  0xf0   : > { %v387_v34 = vadd.f32 %v857_v33, %v801_v14  ;;  %v378_v35 = vpop.f32.mrb[7].mxu0  ;;  %869 = vmatmul.mubr.msk.bf16.vlgmr.msra.gmra.mrb[0].mxu1 %vm461_vm3, %v439_v27  ;;  %v428_v37 = vmax.f32 %v384_v30, 0.0 }
  0xf1   : > { %v379_v36 = vadd.f32 %v801_v14, %v378_v35  ;;  %v426_v39 = vmax.f32 %v376_v32, 0.0 }
  0xf2   : > { %v429_v38 = vmax.f32 %v387_v34, 0.0 }
  0xf3   : > { %v427_v40 = vmax.f32 %v379_v36, 0.0 }
  0xf4   : > { %v441_v41 = vpack.c.bf16 %v429_v38, %v428_v37 }
  0xf5   : > { %v440_v42 = vpack.c.bf16 %v427_v40, %v426_v39  ;;  %v860_v43 = vpop.f32.mrb[8].mxu0 }
  0xf6   : > { %v400_v44 = vadd.f32 %v860_v43, %v801_v14  ;;  %v391_v45 = vpop.f32.mrb[9].mxu0 }
  0xf7   : > { %v392_v46 = vadd.f32 %v801_v14, %v391_v45  ;;  %v861_v47 = vpop.f32.mrb[10].mxu0  ;;  %872 = vmatprep.mubr.msk.bf16.mxu1 %vm461_vm3, %v440_v42 }
  0xf8   : > { %v403_v48 = vadd.f32 %v861_v47, %v801_v14  ;;  %v394_v49 = vpop.f32.mrb[11].mxu0  ;;  %873 = vmatmul.mubr.msk.bf16.gmra.mrb[4].mxu1 %vm461_vm3, %v441_v41  ;;  %v432_v51 = vmax.f32 %v400_v44, 0.0 }
  0xf9   : > { %v395_v50 = vadd.f32 %v801_v14, %v394_v49  ;;  %v430_v53 = vmax.f32 %v392_v46, 0.0 }
  0xfa   : > { %v433_v52 = vmax.f32 %v403_v48, 0.0 }
  0xfb   : > { %v431_v54 = vmax.f32 %v395_v50, 0.0 }
  0xfc   : > { %v443_v55 = vpack.c.bf16 %v433_v52, %v432_v51 }
  0xfd   : > { %v442_v56 = vpack.c.bf16 %v431_v54, %v430_v53  ;;  %v864_v57 = vpop.f32.mrb[12].mxu0 }
  0xfe   : > { %v416_v58 = vadd.f32 %v864_v57, %v801_v14  ;;  %v407_v59 = vpop.f32.mrb[13].mxu0 }
  0xff   : > { %v408_v60 = vadd.f32 %v801_v14, %v407_v59  ;;  %v865_v61 = vpop.f32.mrb[14].mxu0  ;;  %876 = vmatprep.mubr.msk.bf16.mxu1 %vm461_vm3, %v442_v56 }
 0x100   : > { %v419_v62 = vadd.f32 %v865_v61, %v801_v14  ;;  %v410_v63 = vpop.f32.mrb[15].mxu0  ;;  %877 = vmatmul.mubr.msk.bf16.gmra.mrb[8].mxu1 %vm461_vm3, %v443_v55  ;;  %v436_v1 = vmax.f32 %v416_v58, 0.0 }
 0x101   : > { %v411_v0 = vadd.f32 %v801_v14, %v410_v63  ;;  %v434_v3 = vmax.f32 %v408_v60, 0.0 }
 0x102   : > { %v437_v2 = vmax.f32 %v419_v62, 0.0 }
 0x103   : > { %v435_v4 = vmax.f32 %v411_v0, 0.0 }
 0x104   : > { %v445_v5 = vpack.c.bf16 %v437_v2, %v436_v1 }
 0x105   : > { %v444_v6 = vpack.c.bf16 %v435_v4, %v434_v3 }
 0x107   : > { %880 = vmatprep.mubr.msk.bf16.mxu1 %vm461_vm3, %v444_v6 }
 0x108   : > { %881 = vmatmul.mubr.msk.bf16.gmra.mrb[12].mxu1 %vm461_vm3, %v445_v5 }
 0x1c3   : > { %v870_v8 = vpop.f32.mrb[0].mxu1 }
 0x1c4   : > { %v529_v9 = vadd.f32 %v870_v8, %v982_v7  ;;  %v520_v10 = vpop.f32.mrb[1].mxu1 }
 0x1c5   : > { %v521_v11 = vadd.f32 %v982_v7, %v520_v10  ;;  %v871_v12 = vpop.f32.mrb[2].mxu1 }
 0x1c6   : > { %v585_v13 = vmax.f32 %v529_v9, 0.0  ;;  %v532_v14 = vadd.f32 %v871_v12, %v982_v7  ;;  %v523_v15 = vpop.f32.mrb[3].mxu1 }
 0x1c7   : > { %v583_v16 = vmax.f32 %v521_v11, 0.0  ;;  %v524_v17 = vadd.f32 %v982_v7, %v523_v15 }
 0x1c8   : > { %v611_v18 = vrot.slane %v585_v13, 4  ;;  %v586_v19 = vmax.f32 %v532_v14, 0.0 }
 0x1c9   : > { %v599_v20 = vrot.slane %v583_v16, 4  ;;  %v584_v21 = vmax.f32 %v524_v17, 0.0 }
 0x1ca   : > { %v612_v22 = vmax.f32 %v585_v13, %v611_v18  ;;  %v617_v23 = vrot.slane %v586_v19, 4 }
 0x1cb   : > { %v600_v24 = vmax.f32 %v583_v16, %v599_v20  ;;  %v605_v25 = vrot.slane %v584_v21, 4  ;;  %v874_v26 = vpop.f32.mrb[4].mxu1 }
 0x1cc   : > { %v613_v27 = vrot.slane %v612_v22, 2  ;;  %v618_v28 = vmax.f32 %v586_v19, %v617_v23  ;;  %v545_v29 = vadd.f32 %v874_v26, %v982_v7  ;;  %v536_v30 = vpop.f32.mrb[5].mxu1 }
 0x1cd   : > { %v601_v31 = vrot.slane %v600_v24, 2  ;;  %v606_v32 = vmax.f32 %v584_v21, %v605_v25  ;;  %v537_v33 = vadd.f32 %v982_v7, %v536_v30  ;;  %v875_v34 = vpop.f32.mrb[6].mxu1 }
 0x1ce   : > { %v614_v35 = vmax.f32 %v612_v22, %v613_v27  ;;  %v619_v36 = vrot.slane %v618_v28, 2  ;;  %v589_v37 = vmax.f32 %v545_v29, 0.0  ;;  %v548_v38 = vadd.f32 %v875_v34, %v982_v7  ;;  %v539_v39 = vpop.f32.mrb[7].mxu1 }
 0x1cf   : > { %v602_v40 = vmax.f32 %v600_v24, %v601_v31  ;;  %v607_v41 = vrot.slane %v606_v32, 2  ;;  %v587_v42 = vmax.f32 %v537_v33, 0.0  ;;  %v540_v43 = vadd.f32 %v982_v7, %v539_v39 }
 0x1d0   : > { %v615_v44 = vrot.slane %v614_v35, 1  ;;  %v620_v45 = vmax.f32 %v618_v28, %v619_v36  ;;  %v635_v46 = vrot.slane %v589_v37, 4  ;;  %v590_v47 = vmax.f32 %v548_v38, 0.0 }
 0x1d1   : > { %v603_v48 = vrot.slane %v602_v40, 1  ;;  %v608_v49 = vmax.f32 %v606_v32, %v607_v41  ;;  %v623_v50 = vrot.slane %v587_v42, 4  ;;  %v588_v51 = vmax.f32 %v540_v43, 0.0 }
 0x1d2   : > { %v616_v52 = vmax.f32 %v614_v35, %v615_v44  ;;  %v621_v53 = vrot.slane %v620_v45, 1  ;;  %v636_v54 = vmax.f32 %v589_v37, %v635_v46  ;;  %v641_v55 = vrot.slane %v590_v47, 4 }
 0x1d3   : > { %v604_v56 = vmax.f32 %v602_v40, %v603_v48  ;;  %v609_v57 = vrot.slane %v608_v49, 1  ;;  %v624_v58 = vmax.f32 %v587_v42, %v623_v50  ;;  %v629_v59 = vrot.slane %v588_v51, 4  ;;  %v878_v60 = vpop.f32.mrb[8].mxu1 }
 0x1d4   : > { %v622_v61 = vmax.f32 %v620_v45, %v621_v53  ;;  %v637_v62 = vrot.slane %v636_v54, 2  ;;  %v642_v63 = vmax.f32 %v590_v47, %v641_v55  ;;  %v561_v0 = vadd.f32 %v878_v60, %v982_v7  ;;  %v552_v1 = vpop.f32.mrb[9].mxu1 }
 0x1d5   : > { %v610_v2 = vmax.f32 %v608_v49, %v609_v57  ;;  %v625_v3 = vrot.slane %v624_v58, 2  ;;  %v630_v4 = vmax.f32 %v588_v51, %v629_v59  ;;  %v553_v5 = vadd.f32 %v982_v7, %v552_v1  ;;  %v879_v6 = vpop.f32.mrb[10].mxu1 }
 0x1d6   : > { %v638_v8 = vmax.f32 %v636_v54, %v637_v62  ;;  %v643_v9 = vrot.slane %v642_v63, 2  ;;  %v593_v10 = vmax.f32 %v561_v0, 0.0  ;;  %v564_v11 = vadd.f32 %v879_v6, %v982_v7  ;;  %v555_v12 = vpop.f32.mrb[11].mxu1 }
 0x1d7   : > { %v712_v13 = vsel %vm711_vm4, %v610_v2, %v604_v56  ;;  %v626_v14 = vmax.f32 %v624_v58, %v625_v3  ;;  %v631_v15 = vrot.slane %v630_v4, 2  ;;  %v591_v16 = vmax.f32 %v553_v5, 0.0 }
 0x1d8   : > { %v714_v17 = vsel %vm713_vm5, %v616_v52, %v712_v13  ;;  %v639_v18 = vrot.slane %v638_v8, 1  ;;  %v644_v19 = vmax.f32 %v642_v63, %v643_v9  ;;  %v659_v20 = vrot.slane %v593_v10, 4 }
 0x1d9   : > { %v627_v21 = vrot.slane %v626_v14, 1  ;;  %v716_v22 = vsel %vm715_vm6, %v622_v61, %v714_v17  ;;  %v632_v23 = vmax.f32 %v630_v4, %v631_v15  ;;  %v647_v24 = vrot.slane %v591_v16, 4 }
 0x1da   : > { %v645_v25 = vrot.slane %v644_v19, 1  ;;  %v660_v26 = vmax.f32 %v593_v10, %v659_v20  ;;  %v594_v27 = vmax.f32 %v564_v11, 0.0  ;;  %v556_v31 = vadd.f32 %v982_v7, %v555_v12 }
 0x1db   : > { %v628_v28 = vmax.f32 %v626_v14, %v627_v21  ;;  %v633_v29 = vrot.slane %v632_v23, 1  ;;  %v648_v30 = vmax.f32 %v591_v16, %v647_v24  ;;  %v882_v32 = vpop.f32.mrb[12].mxu1  ;;  %v640_v33 = vmax.f32 %v638_v8, %v639_v18 }
 0x1dc   : > { %v665_v34 = vrot.slane %v594_v27, 4  ;;  %v577_v35 = vadd.f32 %v882_v32, %v982_v7  ;;  %v568_v36 = vpop.f32.mrb[13].mxu1  ;;  %v592_v40 = vmax.f32 %v556_v31, 0.0  ;;  %v661_v42 = vrot.slane %v660_v26, 2 }
 0x1dd   : > { %v718_v37 = vsel %vm717_vm7, %v628_v28, %v716_v22  ;;  %v634_v38 = vmax.f32 %v632_v23, %v633_v29  ;;  %v649_v39 = vrot.slane %v648_v30, 2  ;;  %v883_v41 = vpop.f32.mrb[14].mxu1  ;;  %v569_v45 = vadd.f32 %v982_v7, %v568_v36 }
 0x1de   : > { %v666_v43 = vmax.f32 %v594_v27, %v665_v34  ;;  %v597_v44 = vmax.f32 %v577_v35, 0.0  ;;  %v571_v46 = vpop.f32.mrb[15].mxu1  ;;  %v646_v47 = vmax.f32 %v644_v19, %v645_v25  ;;  %v653_v49 = vrot.slane %v592_v40, 4 }
 0x1df   : > { %v720_v48 = vsel %vm719_vm8, %v634_v38, %v718_v37  ;;  %v580_v50 = vadd.f32 %v883_v41, %v982_v7  ;;  %v650_v55 = vmax.f32 %v648_v30, %v649_v39  ;;  %v595_v57 = vmax.f32 %v569_v45, 0.0 }
 0x1e0   : > { %v722_v51 = vsel %vm721_vm9, %v640_v33, %v720_v48  ;;  %v667_v52 = vrot.slane %v666_v43, 2  ;;  %v683_v53 = vrot.slane %v597_v44, 4  ;;  %v654_v56 = vmax.f32 %v592_v40, %v653_v49 }
 0x1e1   : > { %v724_v54 = vsel %vm723_vm10, %v646_v47, %v722_v51  ;;  %v662_v58 = vmax.f32 %v660_v26, %v661_v42  ;;  %v598_v61 = vmax.f32 %v580_v50, 0.0  ;;  %v671_v63 = vrot.slane %v595_v57, 4 }
 0x1e2   : > { %734 = vst [vmem:[%s1016_s12] sm:$0xff] %v724_v54  ;;  %v668_v59 = vmax.f32 %v666_v43, %v667_v52  ;;  %v684_v60 = vmax.f32 %v597_v44, %v683_v53  ;;  %v655_v62 = vrot.slane %v654_v56, 2  ;;  %v572_v0 = vadd.f32 %v982_v7, %v571_v46 }
 0x1e3   : > { %v689_v1 = vrot.slane %v598_v61, 4  ;;  %v651_v2 = vrot.slane %v650_v55, 1  ;;  %v672_v4 = vmax.f32 %v595_v57, %v671_v63  ;;  %v663_v6 = vrot.slane %v662_v58, 1 }
 0x1e4   : > { %v656_v3 = vmax.f32 %v654_v56, %v655_v62  ;;  %v596_v5 = vmax.f32 %v572_v0, 0.0  ;;  %v669_v8 = vrot.slane %v668_v59, 1  ;;  %v685_v9 = vrot.slane %v684_v60, 2 }
 0x1e5   : > { %v690_v10 = vmax.f32 %v598_v61, %v689_v1  ;;  %v673_v12 = vrot.slane %v672_v4, 2  ;;  %v652_v15 = vmax.f32 %v650_v55, %v651_v2  ;;  %v664_v19 = vmax.f32 %v662_v58, %v663_v6 }
 0x1e6   : > { %v657_v11 = vrot.slane %v656_v3, 1  ;;  %v677_v13 = vrot.slane %v596_v5, 4  ;;  %v670_v20 = vmax.f32 %v668_v59, %v669_v8  ;;  %v686_v7 = vmax.f32 %v684_v60, %v685_v9 }
 0x1e7   : > { %v691_v14 = vrot.slane %v690_v10, 2  ;;  %v674_v17 = vmax.f32 %v672_v4, %v673_v12 }
 0x1e8   : > { %v658_v16 = vmax.f32 %v656_v3, %v657_v11  ;;  %v678_v18 = vmax.f32 %v596_v5, %v677_v13  ;;  %v687_v29 = vrot.slane %v686_v7, 1 }
 0x1e9   : > { %v675_v22 = vrot.slane %v674_v17, 1  ;;  %v692_v23 = vmax.f32 %v690_v10, %v691_v14 }
 0x1ea   : > { %v725_v21 = vsel %vm711_vm4, %v658_v16, %v652_v15  ;;  %v679_v24 = vrot.slane %v678_v18, 2  ;;  %v688_v34 = vmax.f32 %v686_v7, %v687_v29 }
 0x1eb   : > { %v726_v25 = vsel %vm713_vm5, %v664_v19, %v725_v21  ;;  %v676_v26 = vmax.f32 %v674_v17, %v675_v22  ;;  %v693_v31 = vrot.slane %v692_v23, 1 }
 0x1ec   : > { %v727_v27 = vsel %vm715_vm6, %v670_v20, %v726_v25  ;;  %v680_v28 = vmax.f32 %v678_v18, %v679_v24 }
 0x1ed   : > { %v728_v30 = vsel %vm717_vm7, %v676_v26, %v727_v27  ;;  %v694_v35 = vmax.f32 %v692_v23, %v693_v31 }
 0x1ee   : > { %v681_v32 = vrot.slane %v680_v28, 1 }
 0x1f0   : > { %v682_v33 = vmax.f32 %v680_v28, %v681_v32 }
 0x1f2   : > { %v729_v36 = vsel %vm719_vm8, %v682_v33, %v728_v30 }
 0x1f3   : > { %v730_v37 = vsel %vm721_vm9, %v688_v34, %v729_v36 }
 0x1f4   : > { %v731_v38 = vsel %vm723_vm10, %v694_v35, %v730_v37 }
 0x1f5   : > { %735 = vst [vmem:[%s1016_s12 + $0x8] sm:$0xff] %v731_v38 }
 0x1f6 PF: > { %s15_s18 = sadd.s32 1, %s908_s18  }
 0x1f7   : > { %p12_p5 = scmp.ge.s32.totalorder %s15_s18, 4  }
 0x1f9   :  { %14 = sbr.rel (!%p12_p5) target bundleno = 1 (0x1), region = 70 }

// kernel: set_abstraction_msg.5
= control target key start
LH: loop header
LB: loop body
LE: loop exit
PB: predicated region body
PF: predicated region fallthrough
CT: control target
= control target key end

     0   :  { %s1309_s18 = smov 0   ;;  %s1482_s0 = inlined_call_operand.vmem [shape: bf16[512,7], index: 0, kind: input, shape index: {}]   ;;  %s1483_s1 = inlined_call_operand.vmem [shape: bf16[7,16], index: 1, kind: input, shape index: {}]   ;;  %s1484_s2 = inlined_call_operand.vmem [shape: f32[1,16], index: 2, kind: input, shape index: {}]   ;;  %s1485_s3 = inlined_call_operand.vmem [shape: bf16[16,128], index: 3, kind: input, shape index: {}]   ;;  %s1486_s4 = inlined_call_operand.vmem [shape: f32[1,128], index: 4, kind: input, shape index: {}]   ;;  %s1487_s5 = inlined_call_operand.vmem [shape: f32[32,128], index: 5, kind: output, shape index: {}]  }
   0x1 LB: > { %s1080_s19 = sadd.s32 4294967295, %s1276_s18   ;;  %p1084_p0 = scmp.ge.s32.totalorder %s1276_s18, 1  ;;  %s1276_s18 = sphi %s1309_s18, %s15_s18  }
   0x2   : > { %p188_p1 = scmp.lt.s32.totalorder %s1276_s18, 3 }
   0x4   : > { %p189_p2 = pnand %p1084_p0, %p188_p1 }
   0x5   : > { %v261_v0 = vld [vmem:[%s1483_s1] sm:$0xf] (!%p189_p2)  ;;  %vm398_vm0 = vcmask (!%p189_p2), 1042432   ;;  %vm399_vm1 = vcmask (!%p189_p2), 1043456   ;;  %s1085_s22 = sshll.u32 (!%p189_p2), %s1080_s19, 5  ;;  %v1278_v1 = vmov (!%p189_p2), 65535  }
   0x6   : > { %192 = sbr.rel (%p189_p2) target bundleno = 532 (0x214), region = 40  ;;  %v400_v2 = vsel (!%p189_p2), %vm398_vm0, 4294967295, %v1278_v1  ;;  %p217_p3 = scmp.lt.s32.totalorder (!%p189_p2), %s1085_s22, 63  ;;  %vm349_vm2 = vcmask (!%p189_p2), 56320   ;;  %v1269_v21 = vld [vmem:[%s1485_s3] sm:$0xff] (!%p189_p2)   ;;  %vm629_vm3 = vcmask (!%p189_p2), 130048  }
   0x7   : > { %v401_v3 = vsel (!%p189_p2), %vm399_vm1, %v400_v2, 0  ;;  %1210 = vmatprep.subr.bf16.mxu1 (!%p189_p2), %v1269_v21  ;;  %v1365_v22 = vld [vmem:[%s1484_s2] ss:$0 sm:$0xff] (!%p189_p2)  ;;  %vm999_vm4 = vcmask (!%p189_p2), 1041409   ;;  %vm1001_vm5 = vcmask (!%p189_p2), 1042434   ;;  %vm1003_vm6 = vcmask (!%p189_p2), 1043459  }
   0x8   : > { %v403_v4 = vand.u32 (!%p189_p2), %v401_v3, %v261_v0  ;;  %1211 = vmatpush3.bf16.msra.mxu1 (!%p189_p2), %v1269_v21  ;;  %s1087_s8 = sshll.u32 (!%p189_p2), %s1080_s19, 1  ;;  %vm1005_vm7 = vcmask (!%p189_p2), 1044484   ;;  %vm1007_vm8 = vcmask (!%p189_p2), 1045509   ;;  %vm1009_vm9 = vcmask (!%p189_p2), 1046534  }
   0x9   : > { %p223_p4 = scmp.lt.s32.totalorder (!%p189_p2), %s1087_s8, 3  ;;  %vm1011_vm10 = vcmask (!%p189_p2), 1047559  }
   0xa   : > { %1176 = vmatprep.subr.bf16.mxu0 (!%p189_p2), %v403_v4 }
   0xb   : > { %1177 = vmatpush3.bf16.msra.mxu0 (!%p189_p2), %v403_v4 }
   0xd   : > { %s1489_s22 = smov (!%p217_p3, %s1085_s22), 63  ;;  %s1491_s8 = smov (!%p223_p4, %s1087_s8), 3 }
   0xe   : > { %s1086_s23 = sshll.u32 %s1489_s22, 2  ;;  %s1088_s9 = sshll.u32 %s1491_s8, 3 }
   0xf   : > { %s1325_s26 = scalar_lea.vmem %s1482_s0, %s1086_s23  ;;  %s1458_s12 = scalar_lea.vmem %s1487_s5, %s1088_s9 }
  0x10   : > { %v1253_v5 = vld [vmem:[%s1325_s26] sm:$0xff]   ;;  %v1254_v6 = vld [vmem:[%s1325_s26 + $0x8] sm:$0xff]   ;;  %v1255_v7 = vld [vmem:[%s1325_s26 + $0x10] sm:$0xff]  }
  0x11   : > { %1178 = vmatprep.mubr.msk.bf16.mxu0 %vm349_vm2, %v1253_v5  ;;  %v1256_v8 = vld [vmem:[%s1325_s26 + $0x18] sm:$0xff]   ;;  %v1257_v9 = vld [vmem:[%s1325_s26 + $0x20] sm:$0xff]   ;;  %v1258_v10 = vld [vmem:[%s1325_s26 + $0x28] sm:$0xff]  }
  0x12   : > { %1179 = vmatmul.mubr.msk.bf16.vlgmr.msra.gmra.mrb[0].mxu0 %vm349_vm2, %v1254_v6  ;;  %v1259_v11 = vld [vmem:[%s1325_s26 + $0x30] sm:$0xff]   ;;  %v1260_v12 = vld [vmem:[%s1325_s26 + $0x38] sm:$0xff]   ;;  %v1261_v13 = vld [vmem:[%s1325_s26 + $0x40] sm:$0xff]  }
  0x13   : > { %1182 = vmatprep.mubr.msk.bf16.mxu0 %vm349_vm2, %v1255_v7  ;;  %v1262_v14 = vld [vmem:[%s1325_s26 + $0x48] sm:$0xff]   ;;  %v1263_v15 = vld [vmem:[%s1325_s26 + $0x50] sm:$0xff]   ;;  %v1264_v16 = vld [vmem:[%s1325_s26 + $0x58] sm:$0xff]  }
  0x14   : > { %v1265_v17 = vld [vmem:[%s1325_s26 + $0x60] sm:$0xff]   ;;  %v1266_v18 = vld [vmem:[%s1325_s26 + $0x68] sm:$0xff]   ;;  %v1267_v19 = vld [vmem:[%s1325_s26 + $0x70] sm:$0xff]  }
  0x15   : > { %v1268_v20 = vld [vmem:[%s1325_s26 + $0x78] sm:$0xff]  }
  0x1a   : > { %1183 = vmatmul.mubr.msk.bf16.gmra.mrb[4].mxu0 %vm349_vm2, %v1256_v8 }
  0x1b   : > { %1186 = vmatprep.mubr.msk.bf16.mxu0 %vm349_vm2, %v1257_v9 }
  0x22   : > { %1187 = vmatmul.mubr.msk.bf16.gmra.mrb[8].mxu0 %vm349_vm2, %v1258_v10 }
  0x23   : > { %1190 = vmatprep.mubr.msk.bf16.mxu0 %vm349_vm2, %v1259_v11 }
  0x2a   : > { %1191 = vmatmul.mubr.msk.bf16.gmra.mrb[12].mxu0 %vm349_vm2, %v1260_v12 }
  0x2b   : > { %1194 = vmatprep.mubr.msk.bf16.mxu0 %vm349_vm2, %v1261_v13 }
  0x32   : > { %1195 = vmatmul.mubr.msk.bf16.gmra.mrb[16].mxu0 %vm349_vm2, %v1262_v14 }
  0x33   : > { %1198 = vmatprep.mubr.msk.bf16.mxu0 %vm349_vm2, %v1263_v15 }
  0x3a   : > { %1199 = vmatmul.mubr.msk.bf16.gmra.mrb[20].mxu0 %vm349_vm2, %v1264_v16 }
  0x3b   : > { %1202 = vmatprep.mubr.msk.bf16.mxu0 %vm349_vm2, %v1265_v17 }
  0x42   : > { %1203 = vmatmul.mubr.msk.bf16.gmra.mrb[24].mxu0 %vm349_vm2, %v1266_v18 }
  0x43   : > { %1206 = vmatprep.mubr.msk.bf16.mxu0 %vm349_vm2, %v1267_v19 }
  0x4a   : > { %1207 = vmatmul.mubr.msk.bf16.gmra.mrb[28].mxu0 %vm349_vm2, %v1268_v20 }
  0xe5   : > { %v1180_v23 = vpop.f32.mrb[0].mxu0 }
  0xe6   : > { %v448_v24 = vadd.f32 %v1180_v23, %v1365_v22  ;;  %v439_v25 = vpop.f32.mrb[1].mxu0 }
  0xe7   : > { %v440_v26 = vadd.f32 %v1365_v22, %v439_v25  ;;  %v1181_v27 = vpop.f32.mrb[2].mxu0 }
  0xe8   : > { %v451_v28 = vadd.f32 %v1181_v27, %v1365_v22  ;;  %v442_v29 = vpop.f32.mrb[3].mxu0  ;;  %v568_v31 = vmax.f32 %v448_v24, 0.0 }
  0xe9   : > { %v443_v30 = vadd.f32 %v1365_v22, %v442_v29  ;;  %v566_v33 = vmax.f32 %v440_v26, 0.0 }
  0xea   : > { %v569_v32 = vmax.f32 %v451_v28, 0.0 }
  0xeb   : > { %v567_v34 = vmax.f32 %v443_v30, 0.0 }
  0xec   : > { %v599_v35 = vpack.c.bf16 %v569_v32, %v568_v31 }
  0xed   : > { %v1184_v36 = vpop.f32.mrb[4].mxu0  ;;  %v598_v37 = vpack.c.bf16 %v567_v34, %v566_v33 }
  0xee   : > { %v464_v38 = vadd.f32 %v1184_v36, %v1365_v22  ;;  %v455_v39 = vpop.f32.mrb[5].mxu0 }
  0xef   : > { %v456_v40 = vadd.f32 %v1365_v22, %v455_v39  ;;  %v1185_v41 = vpop.f32.mrb[6].mxu0  ;;  %1212 = vmatprep.mubr.msk.bf16.mxu1 %vm629_vm3, %v598_v37 }
  0xf0   : > { %v467_v42 = vadd.f32 %v1185_v41, %v1365_v22  ;;  %v458_v43 = vpop.f32.mrb[7].mxu0  ;;  %1213 = vmatmul.mubr.msk.bf16.vlgmr.msra.gmra.mrb[0].mxu1 %vm629_vm3, %v599_v35  ;;  %v572_v45 = vmax.f32 %v464_v38, 0.0 }
  0xf1   : > { %v459_v44 = vadd.f32 %v1365_v22, %v458_v43  ;;  %v570_v47 = vmax.f32 %v456_v40, 0.0 }
  0xf2   : > { %v573_v46 = vmax.f32 %v467_v42, 0.0 }
  0xf3   : > { %v571_v48 = vmax.f32 %v459_v44, 0.0 }
  0xf4   : > { %v601_v49 = vpack.c.bf16 %v573_v46, %v572_v45 }
  0xf5   : > { %v600_v50 = vpack.c.bf16 %v571_v48, %v570_v47  ;;  %v1188_v51 = vpop.f32.mrb[8].mxu0 }
  0xf6   : > { %v480_v52 = vadd.f32 %v1188_v51, %v1365_v22  ;;  %v471_v53 = vpop.f32.mrb[9].mxu0 }
  0xf7   : > { %v472_v54 = vadd.f32 %v1365_v22, %v471_v53  ;;  %v1189_v55 = vpop.f32.mrb[10].mxu0  ;;  %1216 = vmatprep.mubr.msk.bf16.mxu1 %vm629_vm3, %v600_v50 }
  0xf8   : > { %v483_v56 = vadd.f32 %v1189_v55, %v1365_v22  ;;  %v474_v57 = vpop.f32.mrb[11].mxu0  ;;  %1217 = vmatmul.mubr.msk.bf16.gmra.mrb[4].mxu1 %vm629_vm3, %v601_v49  ;;  %v576_v59 = vmax.f32 %v480_v52, 0.0 }
  0xf9   : > { %v475_v58 = vadd.f32 %v1365_v22, %v474_v57  ;;  %v574_v61 = vmax.f32 %v472_v54, 0.0 }
  0xfa   : > { %v577_v60 = vmax.f32 %v483_v56, 0.0 }
  0xfb   : > { %v575_v62 = vmax.f32 %v475_v58, 0.0 }
  0xfc   : > { %v603_v63 = vpack.c.bf16 %v577_v60, %v576_v59 }
  0xfd   : > { %v602_v0 = vpack.c.bf16 %v575_v62, %v574_v61  ;;  %v1192_v1 = vpop.f32.mrb[12].mxu0 }
  0xfe   : > { %v496_v2 = vadd.f32 %v1192_v1, %v1365_v22  ;;  %v487_v3 = vpop.f32.mrb[13].mxu0 }
  0xff   : > { %v488_v4 = vadd.f32 %v1365_v22, %v487_v3  ;;  %v1193_v5 = vpop.f32.mrb[14].mxu0  ;;  %1220 = vmatprep.mubr.msk.bf16.mxu1 %vm629_vm3, %v602_v0 }
 0x100   : > { %v499_v6 = vadd.f32 %v1193_v5, %v1365_v22  ;;  %v490_v7 = vpop.f32.mrb[15].mxu0  ;;  %1221 = vmatmul.mubr.msk.bf16.gmra.mrb[8].mxu1 %vm629_vm3, %v603_v63  ;;  %v580_v9 = vmax.f32 %v496_v2, 0.0 }
 0x101   : > { %v491_v8 = vadd.f32 %v1365_v22, %v490_v7  ;;  %v578_v11 = vmax.f32 %v488_v4, 0.0 }
 0x102   : > { %v581_v10 = vmax.f32 %v499_v6, 0.0 }
 0x103   : > { %v579_v12 = vmax.f32 %v491_v8, 0.0  ;;  %v1418_v8 = vld [vmem:[%s1486_s4] ss:$0 sm:$0xff] }
 0x104   : > { %v605_v13 = vpack.c.bf16 %v581_v10, %v580_v9 }
 0x105   : > { %v604_v14 = vpack.c.bf16 %v579_v12, %v578_v11  ;;  %v1196_v15 = vpop.f32.mrb[16].mxu0 }
 0x106   : > { %v512_v16 = vadd.f32 %v1196_v15, %v1365_v22  ;;  %v503_v17 = vpop.f32.mrb[17].mxu0 }
 0x107   : > { %v504_v18 = vadd.f32 %v1365_v22, %v503_v17  ;;  %v1197_v19 = vpop.f32.mrb[18].mxu0  ;;  %1224 = vmatprep.mubr.msk.bf16.mxu1 %vm629_vm3, %v604_v14 }
 0x108   : > { %v515_v20 = vadd.f32 %v1197_v19, %v1365_v22  ;;  %v506_v21 = vpop.f32.mrb[19].mxu0  ;;  %1225 = vmatmul.mubr.msk.bf16.gmra.mrb[12].mxu1 %vm629_vm3, %v605_v13  ;;  %v584_v24 = vmax.f32 %v512_v16, 0.0 }
 0x109   : > { %v507_v23 = vadd.f32 %v1365_v22, %v506_v21  ;;  %v582_v26 = vmax.f32 %v504_v18, 0.0 }
 0x10a   : > { %v585_v25 = vmax.f32 %v515_v20, 0.0 }
 0x10b   : > { %v583_v27 = vmax.f32 %v507_v23, 0.0 }
 0x10c   : > { %v607_v28 = vpack.c.bf16 %v585_v25, %v584_v24 }
 0x10d   : > { %v606_v29 = vpack.c.bf16 %v583_v27, %v582_v26  ;;  %v1200_v30 = vpop.f32.mrb[20].mxu0 }
 0x10e   : > { %v528_v31 = vadd.f32 %v1200_v30, %v1365_v22  ;;  %v519_v32 = vpop.f32.mrb[21].mxu0 }
 0x10f   : > { %v520_v33 = vadd.f32 %v1365_v22, %v519_v32  ;;  %v1201_v34 = vpop.f32.mrb[22].mxu0  ;;  %1228 = vmatprep.mubr.msk.bf16.mxu1 %vm629_vm3, %v606_v29 }
 0x110   : > { %v531_v35 = vadd.f32 %v1201_v34, %v1365_v22  ;;  %v522_v36 = vpop.f32.mrb[23].mxu0  ;;  %1229 = vmatmul.mubr.msk.bf16.gmra.mrb[16].mxu1 %vm629_vm3, %v607_v28  ;;  %v588_v38 = vmax.f32 %v528_v31, 0.0 }
 0x111   : > { %v523_v37 = vadd.f32 %v1365_v22, %v522_v36  ;;  %v586_v40 = vmax.f32 %v520_v33, 0.0 }
 0x112   : > { %v589_v39 = vmax.f32 %v531_v35, 0.0 }
 0x113   : > { %v587_v41 = vmax.f32 %v523_v37, 0.0 }
 0x114   : > { %v609_v42 = vpack.c.bf16 %v589_v39, %v588_v38 }
 0x115   : > { %v608_v43 = vpack.c.bf16 %v587_v41, %v586_v40  ;;  %v1204_v44 = vpop.f32.mrb[24].mxu0 }
 0x116   : > { %v544_v45 = vadd.f32 %v1204_v44, %v1365_v22  ;;  %v535_v46 = vpop.f32.mrb[25].mxu0 }
 0x117   : > { %v536_v47 = vadd.f32 %v1365_v22, %v535_v46  ;;  %v1205_v48 = vpop.f32.mrb[26].mxu0  ;;  %1232 = vmatprep.mubr.msk.bf16.mxu1 %vm629_vm3, %v608_v43 }
 0x118   : > { %v547_v49 = vadd.f32 %v1205_v48, %v1365_v22  ;;  %v538_v50 = vpop.f32.mrb[27].mxu0  ;;  %1233 = vmatmul.mubr.msk.bf16.gmra.mrb[20].mxu1 %vm629_vm3, %v609_v42  ;;  %v592_v52 = vmax.f32 %v544_v45, 0.0 }
 0x119   : > { %v539_v51 = vadd.f32 %v1365_v22, %v538_v50  ;;  %v590_v54 = vmax.f32 %v536_v47, 0.0 }
 0x11a   : > { %v593_v53 = vmax.f32 %v547_v49, 0.0 }
 0x11b   : > { %v591_v55 = vmax.f32 %v539_v51, 0.0 }
 0x11c   : > { %v611_v56 = vpack.c.bf16 %v593_v53, %v592_v52 }
 0x11d   : > { %v610_v57 = vpack.c.bf16 %v591_v55, %v590_v54  ;;  %v1208_v58 = vpop.f32.mrb[28].mxu0 }
 0x11e   : > { %v560_v59 = vadd.f32 %v1208_v58, %v1365_v22  ;;  %v551_v60 = vpop.f32.mrb[29].mxu0 }
 0x11f   : > { %v552_v61 = vadd.f32 %v1365_v22, %v551_v60  ;;  %v1209_v62 = vpop.f32.mrb[30].mxu0  ;;  %1236 = vmatprep.mubr.msk.bf16.mxu1 %vm629_vm3, %v610_v57 }
 0x120   : > { %v563_v63 = vadd.f32 %v1209_v62, %v1365_v22  ;;  %v554_v0 = vpop.f32.mrb[31].mxu0  ;;  %1237 = vmatmul.mubr.msk.bf16.gmra.mrb[24].mxu1 %vm629_vm3, %v611_v56  ;;  %v596_v2 = vmax.f32 %v560_v59, 0.0 }
 0x121   : > { %v555_v1 = vadd.f32 %v1365_v22, %v554_v0  ;;  %v594_v4 = vmax.f32 %v552_v61, 0.0 }
 0x122   : > { %v597_v3 = vmax.f32 %v563_v63, 0.0 }
 0x123   : > { %v595_v5 = vmax.f32 %v555_v1, 0.0 }
 0x124   : > { %v613_v6 = vpack.c.bf16 %v597_v3, %v596_v2 }
 0x125   : > { %v612_v7 = vpack.c.bf16 %v595_v5, %v594_v4 }
 0x127   : > { %1240 = vmatprep.mubr.msk.bf16.mxu1 %vm629_vm3, %v612_v7 }
 0x128   : > { %1241 = vmatmul.mubr.msk.bf16.gmra.mrb[28].mxu1 %vm629_vm3, %v613_v6 }
 0x1c3   : > { %v1214_v9 = vpop.f32.mrb[0].mxu1 }
 0x1c4   : > { %v721_v10 = vadd.f32 %v1214_v9, %v1418_v8  ;;  %v712_v11 = vpop.f32.mrb[1].mxu1 }
 0x1c5   : > { %v713_v22 = vadd.f32 %v1418_v8, %v712_v11  ;;  %v1215_v12 = vpop.f32.mrb[2].mxu1 }
 0x1c6   : > { %v724_v13 = vadd.f32 %v1215_v12, %v1418_v8  ;;  %v715_v14 = vpop.f32.mrb[3].mxu1  ;;  %v841_v16 = vmax.f32 %v721_v10, 0.0 }
 0x1c7   : > { %v716_v15 = vadd.f32 %v1418_v8, %v715_v14  ;;  %v839_v18 = vmax.f32 %v713_v22, 0.0 }
 0x1c8   : > { %v842_v17 = vmax.f32 %v724_v13, 0.0 }
 0x1c9   : > { %v840_v19 = vmax.f32 %v716_v15, 0.0 }
 0x1ca   : > { %v878_v20 = vmax.f32 %v841_v16, %v842_v17 }
 0x1cb   : > { %v871_v21 = vmax.f32 %v839_v18, %v840_v19  ;;  %v1218_v23 = vpop.f32.mrb[4].mxu1 }
 0x1cc   : > { %v879_v24 = vrot.slane %v878_v20, 4  ;;  %v737_v25 = vadd.f32 %v1218_v23, %v1418_v8  ;;  %v728_v26 = vpop.f32.mrb[5].mxu1 }
 0x1cd   : > { %v872_v27 = vrot.slane %v871_v21, 4  ;;  %v729_v28 = vadd.f32 %v1418_v8, %v728_v26  ;;  %v1219_v29 = vpop.f32.mrb[6].mxu1 }
 0x1ce   : > { %v880_v30 = vmax.f32 %v878_v20, %v879_v24  ;;  %v740_v31 = vadd.f32 %v1219_v29, %v1418_v8  ;;  %v731_v32 = vpop.f32.mrb[7].mxu1  ;;  %v845_v36 = vmax.f32 %v737_v25, 0.0 }
 0x1cf   : > { %v873_v33 = vmax.f32 %v871_v21, %v872_v27  ;;  %v732_v34 = vadd.f32 %v1418_v8, %v731_v32  ;;  %v843_v39 = vmax.f32 %v729_v28, 0.0 }
 0x1d0   : > { %v881_v35 = vrot.slane %v880_v30, 2  ;;  %v846_v37 = vmax.f32 %v740_v31, 0.0 }
 0x1d1   : > { %v874_v38 = vrot.slane %v873_v33, 2  ;;  %v844_v40 = vmax.f32 %v732_v34, 0.0 }
 0x1d2   : > { %v882_v41 = vmax.f32 %v880_v30, %v881_v35  ;;  %v892_v42 = vmax.f32 %v845_v36, %v846_v37 }
 0x1d3   : > { %v875_v43 = vmax.f32 %v873_v33, %v874_v38  ;;  %v885_v44 = vmax.f32 %v843_v39, %v844_v40  ;;  %v1222_v45 = vpop.f32.mrb[8].mxu1 }
 0x1d4   : > { %v883_v46 = vrot.slane %v882_v41, 1  ;;  %v893_v47 = vrot.slane %v892_v42, 4  ;;  %v753_v48 = vadd.f32 %v1222_v45, %v1418_v8  ;;  %v744_v49 = vpop.f32.mrb[9].mxu1 }
 0x1d5   : > { %v876_v50 = vrot.slane %v875_v43, 1  ;;  %v886_v51 = vrot.slane %v885_v44, 4  ;;  %v745_v52 = vadd.f32 %v1418_v8, %v744_v49  ;;  %v1223_v53 = vpop.f32.mrb[10].mxu1 }
 0x1d6   : > { %v884_v54 = vmax.f32 %v882_v41, %v883_v46  ;;  %v894_v55 = vmax.f32 %v892_v42, %v893_v47  ;;  %v756_v56 = vadd.f32 %v1223_v53, %v1418_v8  ;;  %v747_v57 = vpop.f32.mrb[11].mxu1  ;;  %v849_v62 = vmax.f32 %v753_v48, 0.0 }
 0x1d7   : > { %v877_v58 = vmax.f32 %v875_v43, %v876_v50  ;;  %v887_v59 = vmax.f32 %v885_v44, %v886_v51  ;;  %v748_v60 = vadd.f32 %v1418_v8, %v747_v57  ;;  %v847_v2 = vmax.f32 %v745_v52, 0.0 }
 0x1d8   : > { %v895_v61 = vrot.slane %v894_v55, 2  ;;  %v850_v63 = vmax.f32 %v756_v56, 0.0 }
 0x1d9   : > { %v1000_v0 = vsel %vm999_vm4, %v884_v54, %v877_v58  ;;  %v888_v1 = vrot.slane %v887_v59, 2  ;;  %v848_v3 = vmax.f32 %v748_v60, 0.0 }
 0x1da   : > { %v896_v4 = vmax.f32 %v894_v55, %v895_v61  ;;  %v906_v5 = vmax.f32 %v849_v62, %v850_v63 }
 0x1db   : > { %v889_v6 = vmax.f32 %v887_v59, %v888_v1  ;;  %v899_v7 = vmax.f32 %v847_v2, %v848_v3  ;;  %v1226_v9 = vpop.f32.mrb[12].mxu1 }
 0x1dc   : > { %v897_v10 = vrot.slane %v896_v4, 1  ;;  %v907_v11 = vrot.slane %v906_v5, 4  ;;  %v769_v22 = vadd.f32 %v1226_v9, %v1418_v8  ;;  %v760_v12 = vpop.f32.mrb[13].mxu1 }
 0x1dd   : > { %v890_v13 = vrot.slane %v889_v6, 1  ;;  %v900_v14 = vrot.slane %v899_v7, 4  ;;  %v761_v15 = vadd.f32 %v1418_v8, %v760_v12  ;;  %v1227_v16 = vpop.f32.mrb[14].mxu1 }
 0x1de   : > { %v908_v17 = vmax.f32 %v906_v5, %v907_v11  ;;  %v772_v18 = vadd.f32 %v1227_v16, %v1418_v8  ;;  %v763_v19 = vpop.f32.mrb[15].mxu1  ;;  %v898_v24 = vmax.f32 %v896_v4, %v897_v10  ;;  %v853_v26 = vmax.f32 %v769_v22, 0.0 }
 0x1df   : > { %v891_v20 = vmax.f32 %v889_v6, %v890_v13  ;;  %v901_v21 = vmax.f32 %v899_v7, %v900_v14  ;;  %v764_v23 = vadd.f32 %v1418_v8, %v763_v19  ;;  %v851_v30 = vmax.f32 %v761_v15, 0.0 }
 0x1e0   : > { %v909_v25 = vrot.slane %v908_v17, 2  ;;  %v854_v27 = vmax.f32 %v772_v18, 0.0 }
 0x1e1   : > { %v1002_v28 = vsel %vm1001_vm5, %v891_v20, %v1000_v0  ;;  %v902_v29 = vrot.slane %v901_v21, 2  ;;  %v852_v31 = vmax.f32 %v764_v23, 0.0 }
 0x1e2   : > { %v910_v32 = vmax.f32 %v908_v17, %v909_v25  ;;  %v1004_v33 = vsel %vm1003_vm6, %v898_v24, %v1002_v28  ;;  %v920_v34 = vmax.f32 %v853_v26, %v854_v27 }
 0x1e3   : > { %v903_v35 = vmax.f32 %v901_v21, %v902_v29  ;;  %v913_v36 = vmax.f32 %v851_v30, %v852_v31  ;;  %v1230_v37 = vpop.f32.mrb[16].mxu1 }
 0x1e4   : > { %v911_v38 = vrot.slane %v910_v32, 1  ;;  %v921_v39 = vrot.slane %v920_v34, 4  ;;  %v785_v40 = vadd.f32 %v1230_v37, %v1418_v8  ;;  %v776_v41 = vpop.f32.mrb[17].mxu1 }
 0x1e5   : > { %v904_v42 = vrot.slane %v903_v35, 1  ;;  %v914_v43 = vrot.slane %v913_v36, 4  ;;  %v777_v44 = vadd.f32 %v1418_v8, %v776_v41  ;;  %v1231_v45 = vpop.f32.mrb[18].mxu1 }
 0x1e6   : > { %v922_v46 = vmax.f32 %v920_v34, %v921_v39  ;;  %v788_v47 = vadd.f32 %v1231_v45, %v1418_v8  ;;  %v779_v48 = vpop.f32.mrb[19].mxu1  ;;  %v912_v52 = vmax.f32 %v910_v32, %v911_v38  ;;  %v857_v54 = vmax.f32 %v785_v40, 0.0 }
 0x1e7   : > { %v905_v49 = vmax.f32 %v903_v35, %v904_v42  ;;  %v915_v50 = vmax.f32 %v913_v36, %v914_v43  ;;  %v780_v51 = vadd.f32 %v1418_v8, %v779_v48  ;;  %v855_v58 = vmax.f32 %v777_v44, 0.0 }
 0x1e8   : > { %v923_v53 = vrot.slane %v922_v46, 2  ;;  %v858_v55 = vmax.f32 %v788_v47, 0.0 }
 0x1e9   : > { %v1006_v56 = vsel %vm1005_vm7, %v905_v49, %v1004_v33  ;;  %v916_v57 = vrot.slane %v915_v50, 2  ;;  %v856_v59 = vmax.f32 %v780_v51, 0.0 }
 0x1ea   : > { %v924_v60 = vmax.f32 %v922_v46, %v923_v53  ;;  %v1008_v61 = vsel %vm1007_vm8, %v912_v52, %v1006_v56  ;;  %v934_v62 = vmax.f32 %v857_v54, %v858_v55 }
 0x1eb   : > { %v917_v63 = vmax.f32 %v915_v50, %v916_v57  ;;  %v927_v0 = vmax.f32 %v855_v58, %v856_v59  ;;  %v1234_v1 = vpop.f32.mrb[20].mxu1 }
 0x1ec   : > { %v925_v2 = vrot.slane %v924_v60, 1  ;;  %v935_v3 = vrot.slane %v934_v62, 4  ;;  %v801_v4 = vadd.f32 %v1234_v1, %v1418_v8  ;;  %v792_v5 = vpop.f32.mrb[21].mxu1 }
 0x1ed   : > { %v918_v6 = vrot.slane %v917_v63, 1  ;;  %v928_v7 = vrot.slane %v927_v0, 4  ;;  %v793_v9 = vadd.f32 %v1418_v8, %v792_v5  ;;  %v1235_v10 = vpop.f32.mrb[22].mxu1 }
 0x1ee   : > { %v936_v11 = vmax.f32 %v934_v62, %v935_v3  ;;  %v804_v22 = vadd.f32 %v1235_v10, %v1418_v8  ;;  %v795_v12 = vpop.f32.mrb[23].mxu1  ;;  %v926_v16 = vmax.f32 %v924_v60, %v925_v2  ;;  %v861_v18 = vmax.f32 %v801_v4, 0.0 }
 0x1ef   : > { %v919_v13 = vmax.f32 %v917_v63, %v918_v6  ;;  %v929_v14 = vmax.f32 %v927_v0, %v928_v7  ;;  %v796_v15 = vadd.f32 %v1418_v8, %v795_v12  ;;  %v859_v23 = vmax.f32 %v793_v9, 0.0 }
 0x1f0   : > { %v937_v17 = vrot.slane %v936_v11, 2  ;;  %v862_v19 = vmax.f32 %v804_v22, 0.0 }
 0x1f1   : > { %v1010_v20 = vsel %vm1009_vm9, %v919_v13, %v1008_v61  ;;  %v930_v21 = vrot.slane %v929_v14, 2  ;;  %v860_v24 = vmax.f32 %v796_v15, 0.0 }
 0x1f2   : > { %v1012_v25 = vsel %vm1011_vm10, %v926_v16, %v1010_v20  ;;  %v938_v26 = vmax.f32 %v936_v11, %v937_v17  ;;  %v948_v27 = vmax.f32 %v861_v18, %v862_v19 }
 0x1f3   : > { %1022 = vst [vmem:[%s1458_s12] sm:$0xff] %v1012_v25  ;;  %v931_v28 = vmax.f32 %v929_v14, %v930_v21  ;;  %v941_v29 = vmax.f32 %v859_v23, %v860_v24  ;;  %v1238_v30 = vpop.f32.mrb[24].mxu1 }
 0x1f4   : > { %v939_v31 = vrot.slane %v938_v26, 1  ;;  %v949_v32 = vrot.slane %v948_v27, 4  ;;  %v817_v33 = vadd.f32 %v1238_v30, %v1418_v8  ;;  %v808_v34 = vpop.f32.mrb[25].mxu1 }
 0x1f5   : > { %v932_v35 = vrot.slane %v931_v28, 1  ;;  %v942_v36 = vrot.slane %v941_v29, 4  ;;  %v809_v37 = vadd.f32 %v1418_v8, %v808_v34  ;;  %v1239_v38 = vpop.f32.mrb[26].mxu1 }
 0x1f6   : > { %v940_v39 = vmax.f32 %v938_v26, %v939_v31  ;;  %v950_v40 = vmax.f32 %v948_v27, %v949_v32  ;;  %v820_v41 = vadd.f32 %v1239_v38, %v1418_v8  ;;  %v811_v42 = vpop.f32.mrb[27].mxu1  ;;  %v865_v47 = vmax.f32 %v817_v33, 0.0 }
 0x1f7   : > { %v933_v43 = vmax.f32 %v931_v28, %v932_v35  ;;  %v943_v44 = vmax.f32 %v941_v29, %v942_v36  ;;  %v812_v45 = vadd.f32 %v1418_v8, %v811_v42  ;;  %v863_v51 = vmax.f32 %v809_v37, 0.0 }
 0x1f8   : > { %v951_v46 = vrot.slane %v950_v40, 2  ;;  %v866_v48 = vmax.f32 %v820_v41, 0.0 }
 0x1f9   : > { %v1013_v49 = vsel %vm999_vm4, %v940_v39, %v933_v43  ;;  %v944_v50 = vrot.slane %v943_v44, 2  ;;  %v864_v52 = vmax.f32 %v812_v45, 0.0 }
 0x1fa   : > { %v952_v53 = vmax.f32 %v950_v40, %v951_v46  ;;  %v962_v54 = vmax.f32 %v865_v47, %v866_v48 }
 0x1fb   : > { %v945_v55 = vmax.f32 %v943_v44, %v944_v50  ;;  %v955_v56 = vmax.f32 %v863_v51, %v864_v52  ;;  %v1242_v57 = vpop.f32.mrb[28].mxu1 }
 0x1fc   : > { %v953_v58 = vrot.slane %v952_v53, 1  ;;  %v963_v59 = vrot.slane %v962_v54, 4  ;;  %v833_v60 = vadd.f32 %v1242_v57, %v1418_v8  ;;  %v824_v61 = vpop.f32.mrb[29].mxu1 }
 0x1fd   : > { %v946_v62 = vrot.slane %v945_v55, 1  ;;  %v956_v63 = vrot.slane %v955_v56, 4  ;;  %v825_v0 = vadd.f32 %v1418_v8, %v824_v61  ;;  %v1243_v1 = vpop.f32.mrb[30].mxu1 }
 0x1fe   : > { %v964_v2 = vmax.f32 %v962_v54, %v963_v59  ;;  %v836_v3 = vadd.f32 %v1243_v1, %v1418_v8  ;;  %v827_v4 = vpop.f32.mrb[31].mxu1  ;;  %v954_v9 = vmax.f32 %v952_v53, %v953_v58  ;;  %v869_v11 = vmax.f32 %v833_v60, 0.0 }
 0x1ff   : > { %v947_v5 = vmax.f32 %v945_v55, %v946_v62  ;;  %v957_v6 = vmax.f32 %v955_v56, %v956_v63  ;;  %v828_v7 = vadd.f32 %v1418_v8, %v827_v4  ;;  %v867_v14 = vmax.f32 %v825_v0, 0.0 }
 0x200   : > { %v965_v10 = vrot.slane %v964_v2, 2  ;;  %v870_v22 = vmax.f32 %v836_v3, 0.0 }
 0x201   : > { %v1014_v12 = vsel %vm1001_vm5, %v947_v5, %v1013_v49  ;;  %v958_v13 = vrot.slane %v957_v6, 2  ;;  %v868_v15 = vmax.f32 %v828_v7, 0.0 }
 0x202   : > { %v966_v16 = vmax.f32 %v964_v2, %v965_v10  ;;  %v1015_v17 = vsel %vm1003_vm6, %v954_v9, %v1014_v12  ;;  %v976_v18 = vmax.f32 %v869_v11, %v870_v22 }
 0x203   : > { %v959_v19 = vmax.f32 %v957_v6, %v958_v13  ;;  %v969_v20 = vmax.f32 %v867_v14, %v868_v15 }
 0x204   : > { %v967_v21 = vrot.slane %v966_v16, 1  ;;  %v977_v23 = vrot.slane %v976_v18, 4 }
 0x205   : > { %v960_v24 = vrot.slane %v959_v19, 1  ;;  %v970_v25 = vrot.slane %v969_v20, 4 }
 0x206   : > { %v978_v8 = vmax.f32 %v976_v18, %v977_v23  ;;  %v968_v28 = vmax.f32 %v966_v16, %v967_v21 }
 0x207   : > { %v961_v26 = vmax.f32 %v959_v19, %v960_v24  ;;  %v971_v27 = vmax.f32 %v969_v20, %v970_v25 }
 0x208   : > { %v979_v29 = vrot.slane %v978_v8, 2 }
 0x209   : > { %v1016_v30 = vsel %vm1005_vm7, %v961_v26, %v1015_v17  ;;  %v972_v31 = vrot.slane %v971_v27, 2 }
 0x20a   : > { %v980_v32 = vmax.f32 %v978_v8, %v979_v29  ;;  %v1017_v33 = vsel %vm1007_vm8, %v968_v28, %v1016_v30 }
 0x20b   : > { %v973_v34 = vmax.f32 %v971_v27, %v972_v31 }
 0x20c   : > { %v981_v35 = vrot.slane %v980_v32, 1 }
 0x20d   : > { %v974_v36 = vrot.slane %v973_v34, 1 }
 0x20e   : > { %v982_v38 = vmax.f32 %v980_v32, %v981_v35 }
 0x20f   : > { %v975_v37 = vmax.f32 %v973_v34, %v974_v36 }
 0x211   : > { %v1018_v39 = vsel %vm1009_vm9, %v975_v37, %v1017_v33 }
 0x212   : > { %v1019_v40 = vsel %vm1011_vm10, %v982_v38, %v1018_v39 }
 0x213   : > { %1023 = vst [vmem:[%s1458_s12 + $0x8] sm:$0xff] %v1019_v40 }
 0x214 PF: > { %s15_s18 = sadd.s32 1, %s1276_s18  }
 0x215   : > { %p12_p5 = scmp.ge.s32.totalorder %s15_s18, 4  }
 0x217   :  { %14 = sbr.rel (!%p12_p5) target bundleno = 1 (0x1), region = 70 }

</bundles_post_ra>
